<compile_context>
chip_gen: v7x
topology: tpu7x:2x2x1
jax: 0.10.0
libtpu: 0.0.40
codegen_flags: <defaults>
</compile_context>

<pallas_src>
import jax
import jax.numpy as jnp
from jax.experimental import pallas as pl
from jax.experimental.pallas import tpu as pltpu

D_IN, D_HID, D_OUT = 768, 512, 2
D_OUT_PAD = 128          # lane-dense fc2 / output width (real logits in [:, :2])


def _round_up(x, m):
    return (x + m - 1) // m * m


def head_kernel(x_ref, wp_ref, bp_ref, w1_ref, b1_ref, w2_ref, b2_ref, o_ref):
    """pooler -> fc1 -> ReLU -> (dropout=id) -> fc2 -> LogSoftmax, one batch tile."""
    x = x_ref[...]                                                # [TB, 768] f32

    # BERT pooler: tanh(x @ Wp + bp). bf16 operands on the MXU, f32 accumulate.
    p = jnp.dot(x.astype(jnp.bfloat16), wp_ref[...],
                preferred_element_type=jnp.float32) + bp_ref[...]
    cls_hs = jnp.tanh(p)                                          # f32 (EUP)

    # fc1 + ReLU.  Dropout(p=0.1) is identity in eval/inference mode.
    # TODO(synk): training-mode dropout would use pltpu.prng_seed / prng_random_bits.
    h = jnp.dot(cls_hs.astype(jnp.bfloat16), w1_ref[...],
                preferred_element_type=jnp.float32) + b1_ref[...]
    h = jnp.maximum(h, 0.0)                                       # f32 (VPU)

    # fc2, lane-padded to 128 output columns (pad weight cols = 0, pad bias = -1e30).
    logits = jnp.dot(h.astype(jnp.bfloat16), w2_ref[...],
                     preferred_element_type=jnp.float32) + b2_ref[...]

    # LogSoftmax over dim=1, numerically stable; pad lanes contribute exp()~0.
    m = jnp.max(logits, axis=1, keepdims=True)                    # XLU lane reduce
    s = logits - m
    lse = jnp.log(jnp.sum(jnp.exp(s), axis=1, keepdims=True))
    o_ref[...] = s - lse


def bert_arch_head(pooled, params, *, batch_block=256):
    """Fused pooler + classification head. pooled: [B, 768] f32 -> [B, 2] log-probs."""
    B = pooled.shape[0]
    tb = min(batch_block, _round_up(B, 8))     # batch tile (MXU height when B is large)
    bp = _round_up(B, tb)
    if bp != B:
        pooled = jnp.pad(pooled, ((0, bp - B), (0, 0)))

    # TODO(synk): in a serving loop the bf16 weights could be pinned VMEM-resident
    # across calls (cross-call prefetch / input_output_aliases) instead of re-DMAed.
    out = pl.pallas_call(
        head_kernel,
        out_shape=jax.ShapeDtypeStruct((bp, D_OUT_PAD), jnp.float32),
        grid_spec=pltpu.PrefetchScalarGridSpec(
            num_scalar_prefetch=0,
            grid=(bp // tb,),
            in_specs=[
                pl.BlockSpec((tb, D_IN), lambda i: (i, 0)),          # activations (f32)
                pl.BlockSpec((D_IN, D_IN), lambda i: (0, 0)),        # w_pool (bf16)
                pl.BlockSpec((1, D_IN), lambda i: (0, 0)),           # b_pool (f32)
                pl.BlockSpec((D_IN, D_HID), lambda i: (0, 0)),       # w1 (bf16)
                pl.BlockSpec((1, D_HID), lambda i: (0, 0)),          # b1 (f32)
                pl.BlockSpec((D_HID, D_OUT_PAD), lambda i: (0, 0)),  # w2 padded (bf16)
                pl.BlockSpec((1, D_OUT_PAD), lambda i: (0, 0)),      # b2 padded (f32)
            ],
            out_specs=pl.BlockSpec((tb, D_OUT_PAD), lambda i: (i, 0)),
        ),
        compiler_params=pltpu.CompilerParams(
            dimension_semantics=("parallel",)),
    )(pooled, params["w_pool"], params["b_pool"], params["w1"], params["b1"],
      params["w2_pad"], params["b2_pad"])
    return out[:B, :D_OUT]


def embed_and_pool(sent_id, mask, emb_table):
    """Plain-JAX stand-in for the encoder body: embedding gather + masked mean.

    NOT the real pretrained BERT (see TODO at top); the gather stays outside
    the kernel."""
    emb = emb_table[sent_id]                                     # [B, S, 768]
    m = mask.astype(jnp.float32)[..., None]                      # [B, S, 1]
    return (emb * m).sum(axis=1) / jnp.clip(m.sum(axis=1), 1.0)  # [B, 768]


@jax.jit
def bert_arch_forward(sent_id, mask, params):
    pooled = embed_and_pool(sent_id, mask, params["emb"])
    return bert_arch_head(pooled, params)


def reference_forward(sent_id, mask, params):
    """Plain-JAX reference of the same math (bf16 matmul operands, f32 accum)."""
    pooled = embed_and_pool(sent_id, mask, params["emb"])
    p = jnp.dot(pooled.astype(jnp.bfloat16), params["w_pool"],
                preferred_element_type=jnp.float32) + params["b_pool"]
    cls_hs = jnp.tanh(p)
    h = jnp.dot(cls_hs.astype(jnp.bfloat16), params["w1"],
                preferred_element_type=jnp.float32) + params["b1"]
    h = jnp.maximum(h, 0.0)
    logits = jnp.dot(h.astype(jnp.bfloat16), params["w2"],
                     preferred_element_type=jnp.float32) + params["b2"]
    return jax.nn.log_softmax(logits, axis=1)


def init_params(key, vocab=100):
    ks = jax.random.split(key, 6)
    w2 = (jax.random.normal(ks[4], (D_HID, D_OUT), jnp.float32) * 0.02
          ).astype(jnp.bfloat16)
    b2 = jax.random.normal(ks[5], (1, D_OUT), jnp.float32) * 0.02
    w2_pad = jnp.zeros((D_HID, D_OUT_PAD), jnp.bfloat16).at[:, :D_OUT].set(w2)
    b2_pad = jnp.full((1, D_OUT_PAD), -1e30, jnp.float32).at[:, :D_OUT].set(b2)
    return {
        "emb": jax.random.normal(ks[0], (vocab, D_IN), jnp.float32) * 0.02,
        "w_pool": (jax.random.normal(ks[1], (D_IN, D_IN), jnp.float32) * 0.02
                   ).astype(jnp.bfloat16),
        "b_pool": jnp.zeros((1, D_IN), jnp.float32),
        "w1": (jax.random.normal(ks[2], (D_IN, D_HID), jnp.float32) * 0.02
               ).astype(jnp.bfloat16),
        "b1": jax.random.normal(ks[3], (1, D_HID), jnp.float32) * 0.02,
        "w2": w2,            # unpadded, used only by the reference check
        "b2": b2,
        "w2_pad": w2_pad,    # lane-padded versions fed to the kernel
        "b2_pad": b2_pad,
    }


if __name__ == "__main__":
    key = jax.random.PRNGKey(0)
    k_par, k_ids, k_msk = jax.random.split(key, 3)

    B, S = 8, 16
    params = init_params(k_par)
    sent_id = jax.random.randint(k_ids, (B, S), 0, 100, dtype=jnp.int32)
    mask = (jax.random.uniform(k_msk, (B, S)) > 0.2).astype(jnp.int32)

    out = bert_arch_forward(sent_id, mask, params)
    out = jax.block_until_ready(out)

    ref = reference_forward(sent_id, mask, params)
    assert out.shape == (B, D_OUT)
    assert jnp.allclose(out, ref, atol=5e-4, rtol=5e-4), (
        "max abs err = %f" % float(jnp.max(jnp.abs(out - ref))))

    print("KERNEL_OK")
</pallas_src>

<mosaic_0001>
module attributes {stable_mosaic.version = 11 : i64} {
  func.func @head_kernel(%arg0: i32, %arg1: memref<8x768xf32, #tpu.memory_space<vmem>>, %arg2: memref<768x768xbf16, #tpu.memory_space<vmem>>, %arg3: memref<1x768xf32, #tpu.memory_space<vmem>>, %arg4: memref<768x512xbf16, #tpu.memory_space<vmem>>, %arg5: memref<1x512xf32, #tpu.memory_space<vmem>>, %arg6: memref<512x128xbf16, #tpu.memory_space<vmem>>, %arg7: memref<1x128xf32, #tpu.memory_space<vmem>>, %arg8: memref<8x128xf32, #tpu.memory_space<vmem>>) attributes {dimension_semantics = [#tpu.dimension_semantics<parallel>], iteration_bounds = array<i64: 1>, scalar_prefetch = 0 : i64, scratch_operands = 0 : i64, tpu.core_type = #tpu.core_type<tc>, window_params = [{transform_indices = @transform_0, window_bounds = array<i64: 8, 768>}, {pipeline_mode = #tpu.pipeline_mode<synchronous>, transform_indices = @transform_1, window_bounds = array<i64: 768, 768>}, {pipeline_mode = #tpu.pipeline_mode<synchronous>, transform_indices = @transform_2, window_bounds = array<i64: 1, 768>}, {pipeline_mode = #tpu.pipeline_mode<synchronous>, transform_indices = @transform_3, window_bounds = array<i64: 768, 512>}, {pipeline_mode = #tpu.pipeline_mode<synchronous>, transform_indices = @transform_4, window_bounds = array<i64: 1, 512>}, {pipeline_mode = #tpu.pipeline_mode<synchronous>, transform_indices = @transform_5, window_bounds = array<i64: 512, 128>}, {pipeline_mode = #tpu.pipeline_mode<synchronous>, transform_indices = @transform_6, window_bounds = array<i64: 1, 128>}, {transform_indices = @transform_7, window_bounds = array<i64: 8, 128>}]} {
    %c0 = arith.constant 0 : index
    %c0_0 = arith.constant 0 : index
    %0 = vector.load %arg1[%c0, %c0_0] : memref<8x768xf32, #tpu.memory_space<vmem>>, vector<8x768xf32>
    %1 = arith.truncf %0 : vector<8x768xf32> to vector<8x768xbf16>
    %c0_1 = arith.constant 0 : index
    %c0_2 = arith.constant 0 : index
    %2 = vector.load %arg2[%c0_1, %c0_2] : memref<768x768xbf16, #tpu.memory_space<vmem>>, vector<768x768xbf16>
    %cst = arith.constant dense<0.000000e+00> : vector<8x768xf32>
    %3 = tpu.matmul %1, %2, %cst {dimension_numbers = #tpu.dot_dimension_numbers<[1], [0], [0], [1], [0, 0, 1, 1], [], []>} : vector<8x768xbf16>, vector<768x768xbf16>, vector<8x768xf32> -> vector<8x768xf32>
    %c0_3 = arith.constant 0 : index
    %c0_4 = arith.constant 0 : index
    %4 = vector.load %arg3[%c0_3, %c0_4] : memref<1x768xf32, #tpu.memory_space<vmem>>, vector<1x768xf32>
    %5 = vector.broadcast %4 : vector<1x768xf32> to vector<8x768xf32>
    %6 = arith.addf %3, %5 : vector<8x768xf32>
    %7 = math.tanh %6 : vector<8x768xf32>
    %8 = arith.truncf %7 : vector<8x768xf32> to vector<8x768xbf16>
    %c0_5 = arith.constant 0 : index
    %c0_6 = arith.constant 0 : index
    %9 = vector.load %arg4[%c0_5, %c0_6] : memref<768x512xbf16, #tpu.memory_space<vmem>>, vector<768x512xbf16>
    %cst_7 = arith.constant dense<0.000000e+00> : vector<8x512xf32>
    %10 = tpu.matmul %8, %9, %cst_7 {dimension_numbers = #tpu.dot_dimension_numbers<[1], [0], [0], [1], [0, 0, 1, 1], [], []>} : vector<8x768xbf16>, vector<768x512xbf16>, vector<8x512xf32> -> vector<8x512xf32>
    %c0_8 = arith.constant 0 : index
    %c0_9 = arith.constant 0 : index
    %11 = vector.load %arg5[%c0_8, %c0_9] : memref<1x512xf32, #tpu.memory_space<vmem>>, vector<1x512xf32>
    %12 = vector.broadcast %11 : vector<1x512xf32> to vector<8x512xf32>
    %13 = arith.addf %10, %12 : vector<8x512xf32>
    %cst_10 = arith.constant 0.000000e+00 : f32
    %14 = vector.broadcast %cst_10 : f32 to vector<8x512xf32>
    %15 = arith.maximumf %13, %14 : vector<8x512xf32>
    %16 = arith.truncf %15 : vector<8x512xf32> to vector<8x512xbf16>
    %c0_11 = arith.constant 0 : index
    %c0_12 = arith.constant 0 : index
    %17 = vector.load %arg6[%c0_11, %c0_12] : memref<512x128xbf16, #tpu.memory_space<vmem>>, vector<512x128xbf16>
    %cst_13 = arith.constant dense<0.000000e+00> : vector<8x128xf32>
    %18 = tpu.matmul %16, %17, %cst_13 {dimension_numbers = #tpu.dot_dimension_numbers<[1], [0], [0], [1], [0, 0, 1, 1], [], []>} : vector<8x512xbf16>, vector<512x128xbf16>, vector<8x128xf32> -> vector<8x128xf32>
    %c0_14 = arith.constant 0 : index
    %c0_15 = arith.constant 0 : index
    %19 = vector.load %arg7[%c0_14, %c0_15] : memref<1x128xf32, #tpu.memory_space<vmem>>, vector<1x128xf32>
    %20 = vector.broadcast %19 : vector<1x128xf32> to vector<8x128xf32>
    %21 = arith.addf %18, %20 : vector<8x128xf32>
    %cst_16 = arith.constant dense<0xFF800000> : vector<8xf32>
    %22 = vector.multi_reduction <maximumf>, %21, %cst_16 [1] : vector<8x128xf32> to vector<8xf32>
    %23 = vector.shape_cast %22 : vector<8xf32> to vector<8x1xf32>
    %24 = vector.broadcast %23 : vector<8x1xf32> to vector<8x128xf32>
    %25 = arith.subf %21, %24 : vector<8x128xf32>
    %26 = math.exp %25 : vector<8x128xf32>
    %cst_17 = arith.constant dense<0.000000e+00> : vector<8xf32>
    %27 = vector.multi_reduction <add>, %26, %cst_17 [1] : vector<8x128xf32> to vector<8xf32>
    %28 = vector.shape_cast %27 : vector<8xf32> to vector<8x1xf32>
    %29 = math.log %28 : vector<8x1xf32>
    %30 = vector.broadcast %29 : vector<8x1xf32> to vector<8x128xf32>
    %31 = arith.subf %25, %30 : vector<8x128xf32>
    %c0_18 = arith.constant 0 : index
    %c0_19 = arith.constant 0 : index
    %32 = vector.load %arg8[%c0_18, %c0_19] : memref<8x128xf32, #tpu.memory_space<vmem>>, vector<8x128xf32>
    tpu.vector_store %arg8[%c0_18, %c0_19], %31 {strides = array<i32>} : memref<8x128xf32, #tpu.memory_space<vmem>>, vector<8x128xf32>,
    return
  }
  func.func @transform_0(%arg0: i32) -> (i32, i32) {
    %c0_i32 = arith.constant 0 : i32
    %c0_i32_0 = arith.constant 0 : i32
    return %arg0, %c0_i32 : i32, i32
  }
  func.func @transform_1(%arg0: i32) -> (i32, i32) {
    %c0_i32 = arith.constant 0 : i32
    %c0_i32_0 = arith.constant 0 : i32
    %c0_i32_1 = arith.constant 0 : i32
    return %c0_i32, %c0_i32_0 : i32, i32
  }
  func.func @transform_2(%arg0: i32) -> (i32, i32) {
    %c0_i32 = arith.constant 0 : i32
    %c0_i32_0 = arith.constant 0 : i32
    %c0_i32_1 = arith.constant 0 : i32
    return %c0_i32, %c0_i32_0 : i32, i32
  }
  func.func @transform_3(%arg0: i32) -> (i32, i32) {
    %c0_i32 = arith.constant 0 : i32
    %c0_i32_0 = arith.constant 0 : i32
    %c0_i32_1 = arith.constant 0 : i32
    return %c0_i32, %c0_i32_0 : i32, i32
  }
  func.func @transform_4(%arg0: i32) -> (i32, i32) {
    %c0_i32 = arith.constant 0 : i32
    %c0_i32_0 = arith.constant 0 : i32
    %c0_i32_1 = arith.constant 0 : i32
    return %c0_i32, %c0_i32_0 : i32, i32
  }
  func.func @transform_5(%arg0: i32) -> (i32, i32) {
    %c0_i32 = arith.constant 0 : i32
    %c0_i32_0 = arith.constant 0 : i32
    %c0_i32_1 = arith.constant 0 : i32
    return %c0_i32, %c0_i32_0 : i32, i32
  }
  func.func @transform_6(%arg0: i32) -> (i32, i32) {
    %c0_i32 = arith.constant 0 : i32
    %c0_i32_0 = arith.constant 0 : i32
    %c0_i32_1 = arith.constant 0 : i32
    return %c0_i32, %c0_i32_0 : i32, i32
  }
  func.func @transform_7(%arg0: i32) -> (i32, i32) {
    %c0_i32 = arith.constant 0 : i32
    %c0_i32_0 = arith.constant 0 : i32
    return %arg0, %c0_i32 : i32, i32
  }
}

</mosaic_0001>

<bundles_post_ra>
// kernel: bert_arch_forward.1
= control target key start
LH: loop header
LB: loop body
LE: loop exit
PB: predicated region body
PF: predicated region fallthrough
CT: control target
= control target key end

     0   :  { %s7013_s1 = inlined_call_operand.vmem [shape: bf16[768,768], index: 1, kind: input, shape index: {}]   ;;  %s7014_s0 = inlined_call_operand.vmem [shape: f32[8,768], index: 0, kind: input, shape index: {}]   ;;  %s7015_s3 = inlined_call_operand.vmem [shape: bf16[768,512], index: 3, kind: input, shape index: {}]   ;;  %s7016_s2 = inlined_call_operand.vmem [shape: f32[1,768], index: 2, kind: input, shape index: {}]   ;;  %s7017_s5 = inlined_call_operand.vmem [shape: bf16[512,128], index: 5, kind: input, shape index: {}]   ;;  %s7018_s4 = inlined_call_operand.vmem [shape: f32[1,512], index: 4, kind: input, shape index: {}]   ;;  %s7019_s6 = inlined_call_operand.vmem [shape: f32[1,128], index: 6, kind: input, shape index: {}]   ;;  %s7020_s7 = inlined_call_operand.vmem [shape: f32[8,128], index: 7, kind: output, shape index: {}]  }
   0x1   :  { %v4571_v0 = vld [vmem:[%s7013_s1 + $0x4] ss:$24 sps:$4 sm:$0xff]   ;;  %v4575_v2 = vld [vmem:[%s7013_s1] ss:$24 sps:$4 sm:$0xff]   ;;  %v4577_v4 = vld [vmem:[%s7013_s1 + $0x34] ss:$24 sps:$4 sm:$0xff]  }
   0x2   :  { %v4573_v1 = vld [vmem:[%s7013_s1 + $0x304] ss:$24 sps:$4 sm:$0xff]   ;;  %1799 = vmatprep.subr.bf16.mxu1 %v4571_v0  ;;  %v4576_v3 = vld [vmem:[%s7013_s1 + $0x300] ss:$24 sps:$4 sm:$0xff]   ;;  %v4579_v5 = vld [vmem:[%s7013_s1 + $0x334] ss:$24 sps:$4 sm:$0xff]  }
   0x3   :  { %1840 = vmatprep.subr.bf16.mxu0 %v4573_v1  ;;  %1800 = vmatpush1.bf16.msra.mxu1 %v4575_v2  ;;  %v4581_v6 = vld [vmem:[%s7013_s1 + $0x30] ss:$24 sps:$4 sm:$0xff]   ;;  %v4583_v8 = vld [vmem:[%s7013_s1 + $0x64] ss:$24 sps:$4 sm:$0xff]   ;;  %v4587_v10 = vld [vmem:[%s7013_s1 + $0x60] ss:$24 sps:$4 sm:$0xff]  }
   0x4   :  { %1841 = vmatpush1.bf16.msra.mxu0 %v4576_v3  ;;  %1801 = vmatprep.subr.bf16.mxu1 %v4577_v4  ;;  %v4582_v7 = vld [vmem:[%s7013_s1 + $0x330] ss:$24 sps:$4 sm:$0xff]   ;;  %v4585_v9 = vld [vmem:[%s7013_s1 + $0x364] ss:$24 sps:$4 sm:$0xff]   ;;  %v4588_v11 = vld [vmem:[%s7013_s1 + $0x360] ss:$24 sps:$4 sm:$0xff]  }
   0x5   :  { %1842 = vmatprep.subr.bf16.mxu0 %v4579_v5  ;;  %v4589_v12 = vld [vmem:[%s7013_s1 + $0x94] ss:$24 sps:$4 sm:$0xff]   ;;  %v4593_v14 = vld [vmem:[%s7013_s1 + $0x90] ss:$24 sps:$4 sm:$0xff]   ;;  %v4595_v16 = vld [vmem:[%s7013_s1 + $0xc4] ss:$24 sps:$4 sm:$0xff]  }
   0x6   :  { %v4591_v13 = vld [vmem:[%s7013_s1 + $0x394] ss:$24 sps:$4 sm:$0xff]   ;;  %v4594_v15 = vld [vmem:[%s7013_s1 + $0x390] ss:$24 sps:$4 sm:$0xff]   ;;  %v4597_v17 = vld [vmem:[%s7013_s1 + $0x3c4] ss:$24 sps:$4 sm:$0xff]  }
   0x7   :  { %1802 = vmatpush1.bf16.msra.mxu1 %v4581_v6  ;;  %v4599_v18 = vld [vmem:[%s7013_s1 + $0xc0] ss:$24 sps:$4 sm:$0xff]   ;;  %v4601_v20 = vld [vmem:[%s7013_s1 + $0xf4] ss:$24 sps:$4 sm:$0xff]   ;;  %v4605_v22 = vld [vmem:[%s7013_s1 + $0xf0] ss:$24 sps:$4 sm:$0xff]  }
   0x8   :  { %1843 = vmatpush1.bf16.msra.mxu0 %v4582_v7  ;;  %1803 = vmatprep.subr.bf16.mxu1 %v4583_v8  ;;  %v4600_v19 = vld [vmem:[%s7013_s1 + $0x3c0] ss:$24 sps:$4 sm:$0xff]   ;;  %v4603_v21 = vld [vmem:[%s7013_s1 + $0x3f4] ss:$24 sps:$4 sm:$0xff]   ;;  %v4606_v23 = vld [vmem:[%s7013_s1 + $0x3f0] ss:$24 sps:$4 sm:$0xff]  }
   0x9   :  { %1844 = vmatprep.subr.bf16.mxu0 %v4585_v9  ;;  %v4607_v24 = vld [vmem:[%s7013_s1 + $0x124] ss:$24 sps:$4 sm:$0xff]   ;;  %v4611_v26 = vld [vmem:[%s7013_s1 + $0x120] ss:$24 sps:$4 sm:$0xff]   ;;  %v4613_v28 = vld [vmem:[%s7013_s1 + $0x154] ss:$24 sps:$4 sm:$0xff]  }
   0xa   :  { %v4609_v25 = vld [vmem:[%s7013_s1 + $0x424] ss:$24 sps:$4 sm:$0xff]   ;;  %v4612_v27 = vld [vmem:[%s7013_s1 + $0x420] ss:$24 sps:$4 sm:$0xff]   ;;  %v4615_v29 = vld [vmem:[%s7013_s1 + $0x454] ss:$24 sps:$4 sm:$0xff]  }
   0xb   :  { %1804 = vmatpush1.bf16.msra.mxu1 %v4587_v10  ;;  %v4617_v30 = vld [vmem:[%s7013_s1 + $0x150] ss:$24 sps:$4 sm:$0xff]   ;;  %v4619_v32 = vld [vmem:[%s7013_s1 + $0x184] ss:$24 sps:$4 sm:$0xff]   ;;  %v4623_v34 = vld [vmem:[%s7013_s1 + $0x180] ss:$24 sps:$4 sm:$0xff]  }
   0xc   :  { %1845 = vmatpush1.bf16.msra.mxu0 %v4588_v11  ;;  %1805 = vmatprep.subr.bf16.mxu1 %v4589_v12  ;;  %v4618_v31 = vld [vmem:[%s7013_s1 + $0x450] ss:$24 sps:$4 sm:$0xff]   ;;  %v4621_v33 = vld [vmem:[%s7013_s1 + $0x484] ss:$24 sps:$4 sm:$0xff]   ;;  %v4624_v35 = vld [vmem:[%s7013_s1 + $0x480] ss:$24 sps:$4 sm:$0xff]  }
   0xd   :  { %1846 = vmatprep.subr.bf16.mxu0 %v4591_v13  ;;  %v4625_v36 = vld [vmem:[%s7013_s1 + $0x1b4] ss:$24 sps:$4 sm:$0xff]   ;;  %v4629_v38 = vld [vmem:[%s7013_s1 + $0x1b0] ss:$24 sps:$4 sm:$0xff]   ;;  %v4631_v40 = vld [vmem:[%s7013_s1 + $0x1e4] ss:$24 sps:$4 sm:$0xff]  }
   0xe   :  { %v4627_v37 = vld [vmem:[%s7013_s1 + $0x4b4] ss:$24 sps:$4 sm:$0xff]   ;;  %v4630_v39 = vld [vmem:[%s7013_s1 + $0x4b0] ss:$24 sps:$4 sm:$0xff]   ;;  %v4633_v41 = vld [vmem:[%s7013_s1 + $0x4e4] ss:$24 sps:$4 sm:$0xff]  }
   0xf   :  { %1806 = vmatpush1.bf16.msra.mxu1 %v4593_v14  ;;  %v4635_v42 = vld [vmem:[%s7013_s1 + $0x1e0] ss:$24 sps:$4 sm:$0xff]   ;;  %v4637_v44 = vld [vmem:[%s7013_s1 + $0x214] ss:$24 sps:$4 sm:$0xff]   ;;  %v4641_v47 = vld [vmem:[%s7013_s1 + $0x210] ss:$24 sps:$4 sm:$0xff]  }
  0x10   :  { %1847 = vmatpush1.bf16.msra.mxu0 %v4594_v15  ;;  %1807 = vmatprep.subr.bf16.mxu1 %v4595_v16  ;;  %v4636_v43 = vld [vmem:[%s7013_s1 + $0x4e0] ss:$24 sps:$4 sm:$0xff]   ;;  %v4639_v45 = vld [vmem:[%s7013_s1 + $0x514] ss:$24 sps:$4 sm:$0xff]   ;;  %v4642_v50 = vld [vmem:[%s7013_s1 + $0x510] ss:$24 sps:$4 sm:$0xff]  }
  0x11   :  { %1848 = vmatprep.subr.bf16.mxu0 %v4597_v17  ;;  %v28_v46 = vld [vmem:[%s7014_s0 + $0x8] sm:$0xff]  ;;  %v30_v49 = vld [vmem:[%s7014_s0 + $0x18] sm:$0xff]  ;;  %v27_v4 = vld [vmem:[%s7014_s0] sm:$0xff] }
  0x12   :  { %v5523_v48 = vpack.c.bf16 %v28_v46, %v28_v46  ;;  %v4643_v51 = vld [vmem:[%s7013_s1 + $0x244] ss:$24 sps:$4 sm:$0xff]   ;;  %v5534_v52 = vpack.c.bf16 %v30_v49, %v30_v49  ;;  %v4647_v54 = vld [vmem:[%s7013_s1 + $0x240] ss:$24 sps:$4 sm:$0xff]   ;;  %v4649_v56 = vld [vmem:[%s7013_s1 + $0x274] ss:$24 sps:$4 sm:$0xff]   ;;  %v5595_v8 = vpack.c.bf16 %v27_v4, %v27_v4 }
  0x13   :  { %1808 = vmatpush1.bf16.msra.mxu1 %v4599_v18  ;;  %v4645_v53 = vld [vmem:[%s7013_s1 + $0x544] ss:$24 sps:$4 sm:$0xff]   ;;  %v4648_v55 = vld [vmem:[%s7013_s1 + $0x540] ss:$24 sps:$4 sm:$0xff]   ;;  %v4651_v57 = vld [vmem:[%s7013_s1 + $0x574] ss:$24 sps:$4 sm:$0xff]  }
  0x14   :  { %1849 = vmatpush1.bf16.msra.mxu0 %v4600_v19  ;;  %1809 = vmatprep.subr.bf16.mxu1 %v4601_v20  ;;  %v4653_v58 = vld [vmem:[%s7013_s1 + $0x270] ss:$24 sps:$4 sm:$0xff]   ;;  %v4655_v60 = vld [vmem:[%s7013_s1 + $0x2a4] ss:$24 sps:$4 sm:$0xff]   ;;  %v4659_v62 = vld [vmem:[%s7013_s1 + $0x2a0] ss:$24 sps:$4 sm:$0xff]  }
  0x15   :  { %1850 = vmatprep.subr.bf16.mxu0 %v4603_v21  ;;  %1831 = vmatprep.mubr.bf16.mxu1 %v5523_v48  ;;  %v4654_v59 = vld [vmem:[%s7013_s1 + $0x570] ss:$24 sps:$4 sm:$0xff]   ;;  %v4657_v61 = vld [vmem:[%s7013_s1 + $0x5a4] ss:$24 sps:$4 sm:$0xff]   ;;  %v4660_v63 = vld [vmem:[%s7013_s1 + $0x5a0] ss:$24 sps:$4 sm:$0xff]  }
  0x16   :  { %1872 = vmatprep.mubr.bf16.mxu0 %v5534_v52  ;;  %v4661_v0 = vld [vmem:[%s7013_s1 + $0x2d4] ss:$24 sps:$4 sm:$0xff]   ;;  %v4665_v2 = vld [vmem:[%s7013_s1 + $0x2d0] ss:$24 sps:$4 sm:$0xff]   ;;  %v4669_v5 = vld [vmem:[%s7013_s1 + $0x604] ss:$24 sps:$4 sm:$0xff]  }
  0x17   :  { %1810 = vmatpush1.bf16.msra.mxu1 %v4605_v22  ;;  %v4663_v1 = vld [vmem:[%s7013_s1 + $0x5d4] ss:$24 sps:$4 sm:$0xff]   ;;  %v4666_v3 = vld [vmem:[%s7013_s1 + $0x5d0] ss:$24 sps:$4 sm:$0xff]   ;;  %v4667_v9 = vld [vmem:[%s7013_s1 + $0x600] ss:$24 sps:$4 sm:$0xff]  }
  0x18   :  { %1851 = vmatpush1.bf16.msra.mxu0 %v4606_v23  ;;  %1811 = vmatprep.subr.bf16.mxu1 %v4607_v24  ;;  %v29_v6 = vld [vmem:[%s7014_s0 + $0x10] sm:$0xff]  ;;  %v4672_v7 = vld [vmem:[%s7013_s1 + $0xc] ss:$24 sps:$4 sm:$0xff]   ;;  %v4670_v10 = vld [vmem:[%s7013_s1 + $0x8] ss:$24 sps:$4 sm:$0xff]  }
  0x19   :  { %1852 = vmatprep.subr.bf16.mxu0 %v4609_v25  ;;  %v5603_v11 = vpack.c.bf16 %v29_v6, %v29_v6  ;;  %v4675_v12 = vld [vmem:[%s7013_s1 + $0x634] ss:$24 sps:$4 sm:$0xff]   ;;  %v4673_v14 = vld [vmem:[%s7013_s1 + $0x630] ss:$24 sps:$4 sm:$0xff]   ;;  %v4681_v16 = vld [vmem:[%s7013_s1 + $0x664] ss:$24 sps:$4 sm:$0xff]  }
  0x1a   :  { %v4678_v13 = vld [vmem:[%s7013_s1 + $0x3c] ss:$24 sps:$4 sm:$0xff]   ;;  %v4676_v15 = vld [vmem:[%s7013_s1 + $0x38] ss:$24 sps:$4 sm:$0xff]   ;;  %v4684_v17 = vld [vmem:[%s7013_s1 + $0x6c] ss:$24 sps:$4 sm:$0xff]  }
  0x1b   :  { %1812 = vmatpush1.bf16.msra.mxu1 %v4611_v26  ;;  %v4679_v18 = vld [vmem:[%s7013_s1 + $0x660] ss:$24 sps:$4 sm:$0xff]   ;;  %v4687_v20 = vld [vmem:[%s7013_s1 + $0x694] ss:$24 sps:$4 sm:$0xff]   ;;  %v4685_v22 = vld [vmem:[%s7013_s1 + $0x690] ss:$24 sps:$4 sm:$0xff]  }
  0x1c   :  { %1853 = vmatpush1.bf16.msra.mxu0 %v4612_v27  ;;  %1813 = vmatprep.subr.bf16.mxu1 %v4613_v28  ;;  %v4682_v19 = vld [vmem:[%s7013_s1 + $0x68] ss:$24 sps:$4 sm:$0xff]   ;;  %v4690_v21 = vld [vmem:[%s7013_s1 + $0x9c] ss:$24 sps:$4 sm:$0xff]   ;;  %v4688_v23 = vld [vmem:[%s7013_s1 + $0x98] ss:$24 sps:$4 sm:$0xff]  }
  0x1d   :  { %1854 = vmatprep.subr.bf16.mxu0 %v4615_v29  ;;  %v4693_v24 = vld [vmem:[%s7013_s1 + $0x6c4] ss:$24 sps:$4 sm:$0xff]   ;;  %v4691_v26 = vld [vmem:[%s7013_s1 + $0x6c0] ss:$24 sps:$4 sm:$0xff]   ;;  %v4699_v28 = vld [vmem:[%s7013_s1 + $0x6f4] ss:$24 sps:$4 sm:$0xff]  }
  0x1e   :  { %v4696_v25 = vld [vmem:[%s7013_s1 + $0xcc] ss:$24 sps:$4 sm:$0xff]   ;;  %v4694_v27 = vld [vmem:[%s7013_s1 + $0xc8] ss:$24 sps:$4 sm:$0xff]   ;;  %v4702_v29 = vld [vmem:[%s7013_s1 + $0xfc] ss:$24 sps:$4 sm:$0xff]  }
  0x1f   :  { %1814 = vmatpush1.bf16.msra.mxu1 %v4617_v30  ;;  %v4697_v30 = vld [vmem:[%s7013_s1 + $0x6f0] ss:$24 sps:$4 sm:$0xff]   ;;  %v4723_v46 = vld [vmem:[%s7013_s1 + $0x7b4] ss:$24 sps:$4 sm:$0xff]   ;;  %v4753_v4 = vld [vmem:[%s7013_s1 + $0x8a4] ss:$24 sps:$4 sm:$0xff]  }
  0x20   :  { %1855 = vmatpush1.bf16.msra.mxu0 %v4618_v31  ;;  %1815 = vmatprep.subr.bf16.mxu1 %v4619_v32  ;;  %v4700_v31 = vld [vmem:[%s7013_s1 + $0xf8] ss:$24 sps:$4 sm:$0xff]   ;;  %v4705_v32 = vld [vmem:[%s7013_s1 + $0x724] ss:$24 sps:$4 sm:$0xff]  }
  0x21   :  { %1856 = vmatprep.subr.bf16.mxu0 %v4621_v33  ;;  %v4708_v33 = vld [vmem:[%s7013_s1 + $0x12c] ss:$24 sps:$4 sm:$0xff]   ;;  %v4721_v49 = vld [vmem:[%s7013_s1 + $0x7b0] ss:$24 sps:$4 sm:$0xff]   ;;  %v4751_v6 = vld [vmem:[%s7013_s1 + $0x8a0] ss:$24 sps:$4 sm:$0xff]  }
  0x23   :  { %1816 = vmatpush1.bf16.msra.mxu1 %v4623_v34  ;;  %v32_v34 = vld [vmem:[%s7014_s0 + $0x28] sm:$0xff] }
  0x24   :  { %1857 = vmatpush1.bf16.msra.mxu0 %v4624_v35  ;;  %1817 = vmatprep.subr.bf16.mxu1 %v4625_v36  ;;  %v5677_v35 = vpack.c.bf16 %v32_v34, %v32_v34  ;;  %v4703_v36 = vld [vmem:[%s7013_s1 + $0x720] ss:$24 sps:$4 sm:$0xff]   ;;  %v4790_v34 = vld [vmem:[%s7013_s1 + $0xd0] ss:$24 sps:$4 sm:$0xff]  }
  0x25   :  { %1858 = vmatprep.subr.bf16.mxu0 %v4627_v37  ;;  %v4706_v37 = vld [vmem:[%s7013_s1 + $0x128] ss:$24 sps:$4 sm:$0xff]  }
  0x27   :  { %1818 = vmatpush1.bf16.msra.mxu1 %v4629_v38  ;;  %v4711_v38 = vld [vmem:[%s7013_s1 + $0x754] ss:$24 sps:$4 sm:$0xff]  }
  0x28   :  { %1859 = vmatpush1.bf16.msra.mxu0 %v4630_v39  ;;  %1819 = vmatprep.subr.bf16.mxu1 %v4631_v40  ;;  %v4714_v39 = vld [vmem:[%s7013_s1 + $0x15c] ss:$24 sps:$4 sm:$0xff]   ;;  %v4709_v40 = vld [vmem:[%s7013_s1 + $0x750] ss:$24 sps:$4 sm:$0xff]  }
  0x29   :  { %1860 = vmatprep.subr.bf16.mxu0 %v4633_v41  ;;  %v4712_v41 = vld [vmem:[%s7013_s1 + $0x158] ss:$24 sps:$4 sm:$0xff]  }
  0x2b   :  { %1820 = vmatpush1.bf16.msra.mxu1 %v4635_v42  ;;  %v4717_v42 = vld [vmem:[%s7013_s1 + $0x784] ss:$24 sps:$4 sm:$0xff]  }
  0x2c   :  { %1861 = vmatpush1.bf16.msra.mxu0 %v4636_v43  ;;  %1821 = vmatprep.subr.bf16.mxu1 %v4637_v44  ;;  %v4720_v43 = vld [vmem:[%s7013_s1 + $0x18c] ss:$24 sps:$4 sm:$0xff]   ;;  %v4715_v44 = vld [vmem:[%s7013_s1 + $0x780] ss:$24 sps:$4 sm:$0xff]  }
  0x2d   :  { %1862 = vmatprep.subr.bf16.mxu0 %v4639_v45  ;;  %v4718_v45 = vld [vmem:[%s7013_s1 + $0x188] ss:$24 sps:$4 sm:$0xff]  }
  0x2f   :  { %1822 = vmatpush1.bf16.msra.mxu1 %v4641_v47  ;;  %v4726_v47 = vld [vmem:[%s7013_s1 + $0x1bc] ss:$24 sps:$4 sm:$0xff]  }
  0x30   :  { %1863 = vmatpush1.bf16.msra.mxu0 %v4642_v50  ;;  %1823 = vmatprep.subr.bf16.mxu1 %v4643_v51  ;;  %v4724_v50 = vld [vmem:[%s7013_s1 + $0x1b8] ss:$24 sps:$4 sm:$0xff]   ;;  %v4729_v51 = vld [vmem:[%s7013_s1 + $0x7e4] ss:$24 sps:$4 sm:$0xff]  }
  0x31   :  { %1864 = vmatprep.subr.bf16.mxu0 %v4645_v53  ;;  %v4732_v53 = vld [vmem:[%s7013_s1 + $0x1ec] ss:$24 sps:$4 sm:$0xff]  }
  0x33   :  { %1824 = vmatpush1.bf16.msra.mxu1 %v4647_v54  ;;  %v4727_v54 = vld [vmem:[%s7013_s1 + $0x7e0] ss:$24 sps:$4 sm:$0xff]  }
  0x34   :  { %1865 = vmatpush1.bf16.msra.mxu0 %v4648_v55  ;;  %1825 = vmatprep.subr.bf16.mxu1 %v4649_v56  ;;  %v4730_v55 = vld [vmem:[%s7013_s1 + $0x1e8] ss:$24 sps:$4 sm:$0xff]   ;;  %v4735_v56 = vld [vmem:[%s7013_s1 + $0x814] ss:$24 sps:$4 sm:$0xff]  }
  0x35   :  { %1866 = vmatprep.subr.bf16.mxu0 %v4651_v57  ;;  %v4738_v57 = vld [vmem:[%s7013_s1 + $0x21c] ss:$24 sps:$4 sm:$0xff]  }
  0x37   :  { %1826 = vmatpush1.bf16.msra.mxu1 %v4653_v58  ;;  %v4733_v58 = vld [vmem:[%s7013_s1 + $0x810] ss:$24 sps:$4 sm:$0xff]  }
  0x38   :  { %1867 = vmatpush1.bf16.msra.mxu0 %v4654_v59  ;;  %1827 = vmatprep.subr.bf16.mxu1 %v4655_v60  ;;  %v4736_v59 = vld [vmem:[%s7013_s1 + $0x218] ss:$24 sps:$4 sm:$0xff]   ;;  %v4741_v60 = vld [vmem:[%s7013_s1 + $0x844] ss:$24 sps:$4 sm:$0xff]  }
  0x39   :  { %1868 = vmatprep.subr.bf16.mxu0 %v4657_v61  ;;  %v4744_v61 = vld [vmem:[%s7013_s1 + $0x24c] ss:$24 sps:$4 sm:$0xff]  }
  0x3b   :  { %1828 = vmatpush1.bf16.msra.mxu1 %v4659_v62  ;;  %v4739_v62 = vld [vmem:[%s7013_s1 + $0x840] ss:$24 sps:$4 sm:$0xff]  }
  0x3c   :  { %1869 = vmatpush1.bf16.msra.mxu0 %v4660_v63  ;;  %1829 = vmatprep.subr.bf16.mxu1 %v4661_v0  ;;  %v4742_v63 = vld [vmem:[%s7013_s1 + $0x248] ss:$24 sps:$4 sm:$0xff]   ;;  %v4747_v0 = vld [vmem:[%s7013_s1 + $0x874] ss:$24 sps:$4 sm:$0xff]  }
  0x3d   :  { %1870 = vmatprep.subr.bf16.mxu0 %v4663_v1  ;;  %v4750_v1 = vld [vmem:[%s7013_s1 + $0x27c] ss:$24 sps:$4 sm:$0xff]  }
  0x3f   :  { %1830 = vmatpush1.bf16.msra.mxu1 %v4665_v2  ;;  %v4745_v2 = vld [vmem:[%s7013_s1 + $0x870] ss:$24 sps:$4 sm:$0xff]  }
  0x40   :  { %1871 = vmatpush1.bf16.msra.mxu0 %v4666_v3  ;;  %1922 = vmatprep.subr.bf16.mxu1 %v4672_v7  ;;  %v4748_v3 = vld [vmem:[%s7013_s1 + $0x278] ss:$24 sps:$4 sm:$0xff]   ;;  %v4754_v7 = vld [vmem:[%s7013_s1 + $0x2a8] ss:$24 sps:$4 sm:$0xff]  }
  0x41   :  { %1881 = vmatprep.subr.bf16.mxu0 %v4669_v5  ;;  %v4756_v5 = vld [vmem:[%s7013_s1 + $0x2ac] ss:$24 sps:$4 sm:$0xff]  }
  0x42   :  { %1832 = vmatmul.mubr.bf16.vlgmr.msra.gmra.mrb[0].mxu1 %v5595_v8 }
  0x43   :  { %1873 = vmatmul.mubr.bf16.vlgmr.msra.gmra.mrb[0].mxu0 %v5603_v11  ;;  %1923 = vmatpush1.bf16.msra.mxu1 %v4670_v10  ;;  %v4762_v10 = vld [vmem:[%s7013_s1 + $0x2dc] ss:$24 sps:$4 sm:$0xff]  }
  0x44   :  { %1882 = vmatpush1.bf16.msra.mxu0 %v4667_v9  ;;  %1924 = vmatprep.subr.bf16.mxu1 %v4678_v13  ;;  %v4759_v9 = vld [vmem:[%s7013_s1 + $0x8d4] ss:$24 sps:$4 sm:$0xff]   ;;  %v4760_v13 = vld [vmem:[%s7013_s1 + $0x2d8] ss:$24 sps:$4 sm:$0xff]  }
  0x45   :  { %1883 = vmatprep.subr.bf16.mxu0 %v4675_v12  ;;  %1954 = vmatprep.mubr.bf16.mxu1 %v5523_v48  ;;  %v4757_v12 = vld [vmem:[%s7013_s1 + $0x8d0] ss:$24 sps:$4 sm:$0xff]  }
  0x46   :  { %1913 = vmatprep.mubr.bf16.mxu0 %v5677_v35 }
  0x47   :  { %1925 = vmatpush1.bf16.msra.mxu1 %v4676_v15  ;;  %v4765_v15 = vld [vmem:[%s7013_s1 + $0x30c] ss:$24 sps:$4 sm:$0xff]  }
  0x48   :  { %1884 = vmatpush1.bf16.msra.mxu0 %v4673_v14  ;;  %1926 = vmatprep.subr.bf16.mxu1 %v4684_v17  ;;  %v31_v14 = vld [vmem:[%s7014_s0 + $0x20] sm:$0xff] }
  0x49   :  { %1885 = vmatprep.subr.bf16.mxu0 %v4681_v16  ;;  %v4768_v16 = vld [vmem:[%s7013_s1 + $0x14] ss:$24 sps:$4 sm:$0xff]   ;;  %v5803_v17 = vpack.c.bf16 %v31_v14, %v31_v14  ;;  %v4847_v14 = vld [vmem:[%s7013_s1 + $0x5a8] ss:$24 sps:$4 sm:$0xff]  }
  0x4b   :  { %1927 = vmatpush1.bf16.msra.mxu1 %v4682_v19  ;;  %v4766_v19 = vld [vmem:[%s7013_s1 + $0x10] ss:$24 sps:$4 sm:$0xff]  }
  0x4c   :  { %1886 = vmatpush1.bf16.msra.mxu0 %v4679_v18  ;;  %1928 = vmatprep.subr.bf16.mxu1 %v4690_v21  ;;  %v4763_v18 = vld [vmem:[%s7013_s1 + $0x308] ss:$24 sps:$4 sm:$0xff]   ;;  %v4774_v21 = vld [vmem:[%s7013_s1 + $0x44] ss:$24 sps:$4 sm:$0xff]  }
  0x4d   :  { %1887 = vmatprep.subr.bf16.mxu0 %v4687_v20  ;;  %v4771_v20 = vld [vmem:[%s7013_s1 + $0x33c] ss:$24 sps:$4 sm:$0xff]  }
  0x4f   :  { %1929 = vmatpush1.bf16.msra.mxu1 %v4688_v23  ;;  %v4772_v23 = vld [vmem:[%s7013_s1 + $0x40] ss:$24 sps:$4 sm:$0xff]  }
  0x50   :  { %1888 = vmatpush1.bf16.msra.mxu0 %v4685_v22  ;;  %1930 = vmatprep.subr.bf16.mxu1 %v4696_v25  ;;  %v4769_v22 = vld [vmem:[%s7013_s1 + $0x338] ss:$24 sps:$4 sm:$0xff]   ;;  %v4780_v25 = vld [vmem:[%s7013_s1 + $0x74] ss:$24 sps:$4 sm:$0xff]  }
  0x51   :  { %1889 = vmatprep.subr.bf16.mxu0 %v4693_v24  ;;  %v4777_v24 = vld [vmem:[%s7013_s1 + $0x36c] ss:$24 sps:$4 sm:$0xff]  }
  0x53   :  { %1931 = vmatpush1.bf16.msra.mxu1 %v4694_v27  ;;  %v4778_v27 = vld [vmem:[%s7013_s1 + $0x70] ss:$24 sps:$4 sm:$0xff]  }
  0x54   :  { %1890 = vmatpush1.bf16.msra.mxu0 %v4691_v26  ;;  %1932 = vmatprep.subr.bf16.mxu1 %v4702_v29  ;;  %v4775_v26 = vld [vmem:[%s7013_s1 + $0x368] ss:$24 sps:$4 sm:$0xff]   ;;  %v4781_v29 = vld [vmem:[%s7013_s1 + $0x398] ss:$24 sps:$4 sm:$0xff]  }
  0x55   :  { %1891 = vmatprep.subr.bf16.mxu0 %v4699_v28  ;;  %v4783_v28 = vld [vmem:[%s7013_s1 + $0x39c] ss:$24 sps:$4 sm:$0xff]  }
  0x57   :  { %1933 = vmatpush1.bf16.msra.mxu1 %v4700_v31  ;;  %v4789_v31 = vld [vmem:[%s7013_s1 + $0x3cc] ss:$24 sps:$4 sm:$0xff]  }
  0x58   :  { %1892 = vmatpush1.bf16.msra.mxu0 %v4697_v30  ;;  %1934 = vmatprep.subr.bf16.mxu1 %v4708_v33  ;;  %v4784_v30 = vld [vmem:[%s7013_s1 + $0xa0] ss:$24 sps:$4 sm:$0xff]  }
  0x59   :  { %1893 = vmatprep.subr.bf16.mxu0 %v4705_v32  ;;  %v4792_v32 = vld [vmem:[%s7013_s1 + $0xd4] ss:$24 sps:$4 sm:$0xff]   ;;  %v4787_v33 = vld [vmem:[%s7013_s1 + $0x3c8] ss:$24 sps:$4 sm:$0xff]  }
  0x5b   :  { %1935 = vmatpush1.bf16.msra.mxu1 %v4706_v37  ;;  %v4798_v37 = vld [vmem:[%s7013_s1 + $0x104] ss:$24 sps:$4 sm:$0xff]  }
  0x5c   :  { %1894 = vmatpush1.bf16.msra.mxu0 %v4703_v36  ;;  %1936 = vmatprep.subr.bf16.mxu1 %v4714_v39  ;;  %v4795_v36 = vld [vmem:[%s7013_s1 + $0x3fc] ss:$24 sps:$4 sm:$0xff]   ;;  %v4796_v39 = vld [vmem:[%s7013_s1 + $0x100] ss:$24 sps:$4 sm:$0xff]  }
  0x5d   :  { %1895 = vmatprep.subr.bf16.mxu0 %v4711_v38  ;;  %v4793_v38 = vld [vmem:[%s7013_s1 + $0x3f8] ss:$24 sps:$4 sm:$0xff]  }
  0x5f   :  { %1937 = vmatpush1.bf16.msra.mxu1 %v4712_v41  ;;  %v4804_v41 = vld [vmem:[%s7013_s1 + $0x134] ss:$24 sps:$4 sm:$0xff]  }
  0x60   :  { %1896 = vmatpush1.bf16.msra.mxu0 %v4709_v40  ;;  %1938 = vmatprep.subr.bf16.mxu1 %v4720_v43  ;;  %v4801_v40 = vld [vmem:[%s7013_s1 + $0x42c] ss:$24 sps:$4 sm:$0xff]   ;;  %v4802_v43 = vld [vmem:[%s7013_s1 + $0x130] ss:$24 sps:$4 sm:$0xff]  }
  0x61   :  { %1897 = vmatprep.subr.bf16.mxu0 %v4717_v42  ;;  %v4799_v42 = vld [vmem:[%s7013_s1 + $0x428] ss:$24 sps:$4 sm:$0xff]  }
  0x63   :  { %1939 = vmatpush1.bf16.msra.mxu1 %v4718_v45  ;;  %v4810_v45 = vld [vmem:[%s7013_s1 + $0x164] ss:$24 sps:$4 sm:$0xff]  }
  0x64   :  { %1898 = vmatpush1.bf16.msra.mxu0 %v4715_v44  ;;  %1940 = vmatprep.subr.bf16.mxu1 %v4726_v47  ;;  %v4807_v44 = vld [vmem:[%s7013_s1 + $0x45c] ss:$24 sps:$4 sm:$0xff]   ;;  %v4808_v47 = vld [vmem:[%s7013_s1 + $0x160] ss:$24 sps:$4 sm:$0xff]  }
  0x65   :  { %1899 = vmatprep.subr.bf16.mxu0 %v4723_v46  ;;  %v4805_v46 = vld [vmem:[%s7013_s1 + $0x458] ss:$24 sps:$4 sm:$0xff]  }
  0x67   :  { %1941 = vmatpush1.bf16.msra.mxu1 %v4724_v50  ;;  %v4816_v50 = vld [vmem:[%s7013_s1 + $0x194] ss:$24 sps:$4 sm:$0xff]  }
  0x68   :  { %1900 = vmatpush1.bf16.msra.mxu0 %v4721_v49  ;;  %1942 = vmatprep.subr.bf16.mxu1 %v4732_v53  ;;  %v4813_v49 = vld [vmem:[%s7013_s1 + $0x48c] ss:$24 sps:$4 sm:$0xff]   ;;  %v4814_v53 = vld [vmem:[%s7013_s1 + $0x190] ss:$24 sps:$4 sm:$0xff]  }
  0x69   :  { %1901 = vmatprep.subr.bf16.mxu0 %v4729_v51  ;;  %v4811_v51 = vld [vmem:[%s7013_s1 + $0x488] ss:$24 sps:$4 sm:$0xff]  }
  0x6b   :  { %1943 = vmatpush1.bf16.msra.mxu1 %v4730_v55  ;;  %v4822_v55 = vld [vmem:[%s7013_s1 + $0x1c4] ss:$24 sps:$4 sm:$0xff]  }
  0x6c   :  { %1902 = vmatpush1.bf16.msra.mxu0 %v4727_v54  ;;  %1944 = vmatprep.subr.bf16.mxu1 %v4738_v57  ;;  %v4819_v54 = vld [vmem:[%s7013_s1 + $0x4bc] ss:$24 sps:$4 sm:$0xff]   ;;  %v4820_v57 = vld [vmem:[%s7013_s1 + $0x1c0] ss:$24 sps:$4 sm:$0xff]  }
  0x6d   :  { %1903 = vmatprep.subr.bf16.mxu0 %v4735_v56  ;;  %v4817_v56 = vld [vmem:[%s7013_s1 + $0x4b8] ss:$24 sps:$4 sm:$0xff]  }
  0x6f   :  { %1945 = vmatpush1.bf16.msra.mxu1 %v4736_v59  ;;  %v4828_v59 = vld [vmem:[%s7013_s1 + $0x1f4] ss:$24 sps:$4 sm:$0xff]  }
  0x70   :  { %1904 = vmatpush1.bf16.msra.mxu0 %v4733_v58  ;;  %1946 = vmatprep.subr.bf16.mxu1 %v4744_v61  ;;  %v4825_v58 = vld [vmem:[%s7013_s1 + $0x4ec] ss:$24 sps:$4 sm:$0xff]   ;;  %v4826_v61 = vld [vmem:[%s7013_s1 + $0x1f0] ss:$24 sps:$4 sm:$0xff]  }
  0x71   :  { %1905 = vmatprep.subr.bf16.mxu0 %v4741_v60  ;;  %v4823_v60 = vld [vmem:[%s7013_s1 + $0x4e8] ss:$24 sps:$4 sm:$0xff]  }
  0x73   :  { %1947 = vmatpush1.bf16.msra.mxu1 %v4742_v63  ;;  %v4834_v63 = vld [vmem:[%s7013_s1 + $0x224] ss:$24 sps:$4 sm:$0xff]  }
  0x74   :  { %1906 = vmatpush1.bf16.msra.mxu0 %v4739_v62  ;;  %1948 = vmatprep.subr.bf16.mxu1 %v4750_v1  ;;  %v4831_v62 = vld [vmem:[%s7013_s1 + $0x51c] ss:$24 sps:$4 sm:$0xff]   ;;  %v4832_v1 = vld [vmem:[%s7013_s1 + $0x220] ss:$24 sps:$4 sm:$0xff]  }
  0x75   :  { %1907 = vmatprep.subr.bf16.mxu0 %v4747_v0  ;;  %v4829_v0 = vld [vmem:[%s7013_s1 + $0x518] ss:$24 sps:$4 sm:$0xff]  }
  0x77   :  { %1949 = vmatpush1.bf16.msra.mxu1 %v4748_v3  ;;  %v4840_v3 = vld [vmem:[%s7013_s1 + $0x254] ss:$24 sps:$4 sm:$0xff]  }
  0x78   :  { %1908 = vmatpush1.bf16.msra.mxu0 %v4745_v2  ;;  %1950 = vmatprep.subr.bf16.mxu1 %v4756_v5  ;;  %v4837_v2 = vld [vmem:[%s7013_s1 + $0x54c] ss:$24 sps:$4 sm:$0xff]   ;;  %v4838_v5 = vld [vmem:[%s7013_s1 + $0x250] ss:$24 sps:$4 sm:$0xff]  }
  0x79   :  { %1909 = vmatprep.subr.bf16.mxu0 %v4753_v4  ;;  %v4835_v4 = vld [vmem:[%s7013_s1 + $0x548] ss:$24 sps:$4 sm:$0xff]  }
  0x7b   :  { %1951 = vmatpush1.bf16.msra.mxu1 %v4754_v7  ;;  %v4846_v7 = vld [vmem:[%s7013_s1 + $0x284] ss:$24 sps:$4 sm:$0xff]  }
  0x7c   :  { %1910 = vmatpush1.bf16.msra.mxu0 %v4751_v6  ;;  %1952 = vmatprep.subr.bf16.mxu1 %v4762_v10  ;;  %v4843_v6 = vld [vmem:[%s7013_s1 + $0x57c] ss:$24 sps:$4 sm:$0xff]   ;;  %v4844_v10 = vld [vmem:[%s7013_s1 + $0x280] ss:$24 sps:$4 sm:$0xff]  }
  0x7d   :  { %1911 = vmatprep.subr.bf16.mxu0 %v4759_v9  ;;  %v4841_v9 = vld [vmem:[%s7013_s1 + $0x578] ss:$24 sps:$4 sm:$0xff]  }
  0x7f   :  { %1953 = vmatpush1.bf16.msra.mxu1 %v4760_v13  ;;  %v4852_v13 = vld [vmem:[%s7013_s1 + $0x2b4] ss:$24 sps:$4 sm:$0xff]  }
  0x80   :  { %1912 = vmatpush1.bf16.msra.mxu0 %v4757_v12  ;;  %1963 = vmatprep.subr.bf16.mxu1 %v4765_v15  ;;  %v4849_v12 = vld [vmem:[%s7013_s1 + $0x5ac] ss:$24 sps:$4 sm:$0xff]   ;;  %v4850_v15 = vld [vmem:[%s7013_s1 + $0x2b0] ss:$24 sps:$4 sm:$0xff]  }
  0x81   :  { %2045 = vmatprep.subr.bf16.mxu0 %v4768_v16  ;;  %v4855_v16 = vld [vmem:[%s7013_s1 + $0x5dc] ss:$24 sps:$4 sm:$0xff]  }
  0x82   :  { %1955 = vmatmul.mubr.bf16.vlgmr.msra.gmra.mrb[4].mxu1 %v5595_v8 }
  0x83   :  { %1914 = vmatmul.mubr.bf16.vlgmr.msra.gmra.mrb[0].mxu0 %v5803_v17  ;;  %1964 = vmatpush1.bf16.msra.mxu1 %v4763_v18  ;;  %v4858_v18 = vld [vmem:[%s7013_s1 + $0x2e4] ss:$24 sps:$4 sm:$0xff]  }
  0x84   :  { %2046 = vmatpush1.bf16.msra.mxu0 %v4766_v19  ;;  %1965 = vmatprep.subr.bf16.mxu1 %v4771_v20  ;;  %v4853_v19 = vld [vmem:[%s7013_s1 + $0x5d8] ss:$24 sps:$4 sm:$0xff]  }
  0x85   :  { %2047 = vmatprep.subr.bf16.mxu0 %v4774_v21  ;;  %1995 = vmatprep.mubr.bf16.mxu1 %v5534_v52  ;;  %v4856_v20 = vld [vmem:[%s7013_s1 + $0x2e0] ss:$24 sps:$4 sm:$0xff]   ;;  %v4861_v21 = vld [vmem:[%s7013_s1 + $0x60c] ss:$24 sps:$4 sm:$0xff]  }
  0x86   :  { %2077 = vmatprep.mubr.bf16.mxu0 %v5523_v48  ;;  %v4786_v48 = vld [vmem:[%s7013_s1 + $0xa4] ss:$24 sps:$4 sm:$0xff]  }
  0x87   :  { %1966 = vmatpush1.bf16.msra.mxu1 %v4769_v22  ;;  %v4864_v22 = vld [vmem:[%s7013_s1 + $0x314] ss:$24 sps:$4 sm:$0xff]  }
  0x88   :  { %2048 = vmatpush1.bf16.msra.mxu0 %v4772_v23  ;;  %1967 = vmatprep.subr.bf16.mxu1 %v4777_v24  ;;  %v4859_v23 = vld [vmem:[%s7013_s1 + $0x608] ss:$24 sps:$4 sm:$0xff]  }
  0x89   :  { %2049 = vmatprep.subr.bf16.mxu0 %v4780_v25  ;;  %v4862_v24 = vld [vmem:[%s7013_s1 + $0x310] ss:$24 sps:$4 sm:$0xff]   ;;  %v4867_v25 = vld [vmem:[%s7013_s1 + $0x63c] ss:$24 sps:$4 sm:$0xff]  }
  0x8b   :  { %1968 = vmatpush1.bf16.msra.mxu1 %v4775_v26  ;;  %v4870_v26 = vld [vmem:[%s7013_s1 + $0x344] ss:$24 sps:$4 sm:$0xff]  }
  0x8c   :  { %2050 = vmatpush1.bf16.msra.mxu0 %v4778_v27  ;;  %1969 = vmatprep.subr.bf16.mxu1 %v4783_v28  ;;  %v4865_v27 = vld [vmem:[%s7013_s1 + $0x638] ss:$24 sps:$4 sm:$0xff]  }
  0x8d   :  { %2051 = vmatprep.subr.bf16.mxu0 %v4786_v48  ;;  %v4868_v28 = vld [vmem:[%s7013_s1 + $0x340] ss:$24 sps:$4 sm:$0xff]   ;;  %v4873_v48 = vld [vmem:[%s7013_s1 + $0x66c] ss:$24 sps:$4 sm:$0xff]  }
  0x8f   :  { %1970 = vmatpush1.bf16.msra.mxu1 %v4781_v29  ;;  %v4871_v29 = vld [vmem:[%s7013_s1 + $0x668] ss:$24 sps:$4 sm:$0xff]  }
  0x90   :  { %2052 = vmatpush1.bf16.msra.mxu0 %v4784_v30  ;;  %1971 = vmatprep.subr.bf16.mxu1 %v4789_v31  ;;  %v4874_v30 = vld [vmem:[%s7013_s1 + $0x370] ss:$24 sps:$4 sm:$0xff]   ;;  %v4879_v31 = vld [vmem:[%s7013_s1 + $0x69c] ss:$24 sps:$4 sm:$0xff]  }
  0x91   :  { %2053 = vmatprep.subr.bf16.mxu0 %v4792_v32  ;;  %v4877_v32 = vld [vmem:[%s7013_s1 + $0x698] ss:$24 sps:$4 sm:$0xff]  }
  0x93   :  { %1972 = vmatpush1.bf16.msra.mxu1 %v4787_v33  ;;  %v4880_v33 = vld [vmem:[%s7013_s1 + $0x3a0] ss:$24 sps:$4 sm:$0xff]  }
  0x94   :  { %2054 = vmatpush1.bf16.msra.mxu0 %v4790_v34  ;;  %1973 = vmatprep.subr.bf16.mxu1 %v4795_v36  ;;  %v4885_v34 = vld [vmem:[%s7013_s1 + $0x6cc] ss:$24 sps:$4 sm:$0xff]  }
  0x95   :  { %2055 = vmatprep.subr.bf16.mxu0 %v4798_v37  ;;  %v4888_v36 = vld [vmem:[%s7013_s1 + $0x3d4] ss:$24 sps:$4 sm:$0xff]   ;;  %v4883_v37 = vld [vmem:[%s7013_s1 + $0x6c8] ss:$24 sps:$4 sm:$0xff]  }
  0x97   :  { %1974 = vmatpush1.bf16.msra.mxu1 %v4793_v38  ;;  %v4886_v38 = vld [vmem:[%s7013_s1 + $0x3d0] ss:$24 sps:$4 sm:$0xff]  }
  0x98   :  { %2056 = vmatpush1.bf16.msra.mxu0 %v4796_v39  ;;  %1975 = vmatprep.subr.bf16.mxu1 %v4801_v40  ;;  %v4891_v39 = vld [vmem:[%s7013_s1 + $0x6fc] ss:$24 sps:$4 sm:$0xff]  }
  0x99   :  { %2057 = vmatprep.subr.bf16.mxu0 %v4804_v41  ;;  %v4894_v40 = vld [vmem:[%s7013_s1 + $0x404] ss:$24 sps:$4 sm:$0xff]   ;;  %v4889_v41 = vld [vmem:[%s7013_s1 + $0x6f8] ss:$24 sps:$4 sm:$0xff]  }
  0x9b   :  { %1976 = vmatpush1.bf16.msra.mxu1 %v4799_v42  ;;  %v4892_v42 = vld [vmem:[%s7013_s1 + $0x400] ss:$24 sps:$4 sm:$0xff]  }
  0x9c   :  { %2058 = vmatpush1.bf16.msra.mxu0 %v4802_v43  ;;  %1977 = vmatprep.subr.bf16.mxu1 %v4807_v44  ;;  %v4897_v43 = vld [vmem:[%s7013_s1 + $0x72c] ss:$24 sps:$4 sm:$0xff]  }
  0x9d   :  { %2059 = vmatprep.subr.bf16.mxu0 %v4810_v45  ;;  %v4900_v44 = vld [vmem:[%s7013_s1 + $0x434] ss:$24 sps:$4 sm:$0xff]   ;;  %v4895_v45 = vld [vmem:[%s7013_s1 + $0x728] ss:$24 sps:$4 sm:$0xff]  }
  0x9f   :  { %1978 = vmatpush1.bf16.msra.mxu1 %v4805_v46  ;;  %v4898_v46 = vld [vmem:[%s7013_s1 + $0x430] ss:$24 sps:$4 sm:$0xff]  }
  0xa0   :  { %2060 = vmatpush1.bf16.msra.mxu0 %v4808_v47  ;;  %1979 = vmatprep.subr.bf16.mxu1 %v4813_v49  ;;  %v4903_v47 = vld [vmem:[%s7013_s1 + $0x75c] ss:$24 sps:$4 sm:$0xff]  }
  0xa1   :  { %2061 = vmatprep.subr.bf16.mxu0 %v4816_v50  ;;  %v4906_v49 = vld [vmem:[%s7013_s1 + $0x464] ss:$24 sps:$4 sm:$0xff]   ;;  %v4901_v50 = vld [vmem:[%s7013_s1 + $0x758] ss:$24 sps:$4 sm:$0xff]  }
  0xa3   :  { %1980 = vmatpush1.bf16.msra.mxu1 %v4811_v51  ;;  %v4904_v51 = vld [vmem:[%s7013_s1 + $0x460] ss:$24 sps:$4 sm:$0xff]  }
  0xa4   :  { %2062 = vmatpush1.bf16.msra.mxu0 %v4814_v53  ;;  %1981 = vmatprep.subr.bf16.mxu1 %v4819_v54  ;;  %v4909_v53 = vld [vmem:[%s7013_s1 + $0x78c] ss:$24 sps:$4 sm:$0xff]  }
  0xa5   :  { %2063 = vmatprep.subr.bf16.mxu0 %v4822_v55  ;;  %v4912_v54 = vld [vmem:[%s7013_s1 + $0x494] ss:$24 sps:$4 sm:$0xff]   ;;  %v4907_v55 = vld [vmem:[%s7013_s1 + $0x788] ss:$24 sps:$4 sm:$0xff]  }
  0xa7   :  { %1982 = vmatpush1.bf16.msra.mxu1 %v4817_v56  ;;  %v4910_v56 = vld [vmem:[%s7013_s1 + $0x490] ss:$24 sps:$4 sm:$0xff]  }
  0xa8   :  { %2064 = vmatpush1.bf16.msra.mxu0 %v4820_v57  ;;  %1983 = vmatprep.subr.bf16.mxu1 %v4825_v58  ;;  %v4915_v57 = vld [vmem:[%s7013_s1 + $0x7bc] ss:$24 sps:$4 sm:$0xff]  }
  0xa9   :  { %2065 = vmatprep.subr.bf16.mxu0 %v4828_v59  ;;  %v4918_v58 = vld [vmem:[%s7013_s1 + $0x4c4] ss:$24 sps:$4 sm:$0xff]   ;;  %v4913_v59 = vld [vmem:[%s7013_s1 + $0x7b8] ss:$24 sps:$4 sm:$0xff]  }
  0xab   :  { %1984 = vmatpush1.bf16.msra.mxu1 %v4823_v60  ;;  %v4916_v60 = vld [vmem:[%s7013_s1 + $0x4c0] ss:$24 sps:$4 sm:$0xff]  }
  0xac   :  { %2066 = vmatpush1.bf16.msra.mxu0 %v4826_v61  ;;  %1985 = vmatprep.subr.bf16.mxu1 %v4831_v62  ;;  %v4921_v61 = vld [vmem:[%s7013_s1 + $0x7ec] ss:$24 sps:$4 sm:$0xff]  }
  0xad   :  { %2067 = vmatprep.subr.bf16.mxu0 %v4834_v63  ;;  %v4924_v62 = vld [vmem:[%s7013_s1 + $0x4f4] ss:$24 sps:$4 sm:$0xff]   ;;  %v4919_v63 = vld [vmem:[%s7013_s1 + $0x7e8] ss:$24 sps:$4 sm:$0xff]  }
  0xaf   :  { %1986 = vmatpush1.bf16.msra.mxu1 %v4829_v0  ;;  %v4922_v0 = vld [vmem:[%s7013_s1 + $0x4f0] ss:$24 sps:$4 sm:$0xff]  }
  0xb0   :  { %2068 = vmatpush1.bf16.msra.mxu0 %v4832_v1  ;;  %1987 = vmatprep.subr.bf16.mxu1 %v4837_v2  ;;  %v4927_v1 = vld [vmem:[%s7013_s1 + $0x81c] ss:$24 sps:$4 sm:$0xff]  }
  0xb1   :  { %2069 = vmatprep.subr.bf16.mxu0 %v4840_v3  ;;  %v4930_v2 = vld [vmem:[%s7013_s1 + $0x524] ss:$24 sps:$4 sm:$0xff]   ;;  %v4925_v3 = vld [vmem:[%s7013_s1 + $0x818] ss:$24 sps:$4 sm:$0xff]  }
  0xb3   :  { %1988 = vmatpush1.bf16.msra.mxu1 %v4835_v4  ;;  %v4928_v4 = vld [vmem:[%s7013_s1 + $0x520] ss:$24 sps:$4 sm:$0xff]  }
  0xb4   :  { %2070 = vmatpush1.bf16.msra.mxu0 %v4838_v5  ;;  %1989 = vmatprep.subr.bf16.mxu1 %v4843_v6  ;;  %v4933_v5 = vld [vmem:[%s7013_s1 + $0x84c] ss:$24 sps:$4 sm:$0xff]  }
  0xb5   :  { %2071 = vmatprep.subr.bf16.mxu0 %v4846_v7  ;;  %v4936_v6 = vld [vmem:[%s7013_s1 + $0x554] ss:$24 sps:$4 sm:$0xff]   ;;  %v4931_v7 = vld [vmem:[%s7013_s1 + $0x848] ss:$24 sps:$4 sm:$0xff]  }
  0xb7   :  { %1990 = vmatpush1.bf16.msra.mxu1 %v4841_v9  ;;  %v4934_v9 = vld [vmem:[%s7013_s1 + $0x550] ss:$24 sps:$4 sm:$0xff]  }
  0xb8   :  { %2072 = vmatpush1.bf16.msra.mxu0 %v4844_v10  ;;  %1991 = vmatprep.subr.bf16.mxu1 %v4849_v12  ;;  %v4939_v10 = vld [vmem:[%s7013_s1 + $0x87c] ss:$24 sps:$4 sm:$0xff]  }
  0xb9   :  { %2073 = vmatprep.subr.bf16.mxu0 %v4852_v13  ;;  %v4942_v12 = vld [vmem:[%s7013_s1 + $0x584] ss:$24 sps:$4 sm:$0xff]   ;;  %v4937_v13 = vld [vmem:[%s7013_s1 + $0x878] ss:$24 sps:$4 sm:$0xff]  }
  0xbb   :  { %1992 = vmatpush1.bf16.msra.mxu1 %v4847_v14  ;;  %v4940_v14 = vld [vmem:[%s7013_s1 + $0x580] ss:$24 sps:$4 sm:$0xff]  }
  0xbc   :  { %2074 = vmatpush1.bf16.msra.mxu0 %v4850_v15  ;;  %1993 = vmatprep.subr.bf16.mxu1 %v4855_v16  ;;  %v4945_v15 = vld [vmem:[%s7013_s1 + $0x8ac] ss:$24 sps:$4 sm:$0xff]  }
  0xbd   :  { %2075 = vmatprep.subr.bf16.mxu0 %v4858_v18  ;;  %v4948_v16 = vld [vmem:[%s7013_s1 + $0x5b4] ss:$24 sps:$4 sm:$0xff]   ;;  %v4943_v18 = vld [vmem:[%s7013_s1 + $0x8a8] ss:$24 sps:$4 sm:$0xff]  }
  0xbf   :  { %1994 = vmatpush1.bf16.msra.mxu1 %v4853_v19  ;;  %v4946_v19 = vld [vmem:[%s7013_s1 + $0x5b0] ss:$24 sps:$4 sm:$0xff]  }
  0xc0   :  { %2076 = vmatpush1.bf16.msra.mxu0 %v4856_v20  ;;  %2004 = vmatprep.subr.bf16.mxu1 %v4861_v21  ;;  %v4951_v20 = vld [vmem:[%s7013_s1 + $0x8dc] ss:$24 sps:$4 sm:$0xff]  }
  0xc1   :  { %2086 = vmatprep.subr.bf16.mxu0 %v4864_v22  ;;  %v4954_v21 = vld [vmem:[%s7013_s1 + $0x5e4] ss:$24 sps:$4 sm:$0xff]   ;;  %v4949_v22 = vld [vmem:[%s7013_s1 + $0x8d8] ss:$24 sps:$4 sm:$0xff]  }
  0xc2   :  { %1996 = vmatmul.mubr.bf16.vlgmr.msra.gmra.mrb[4].mxu1 %v5603_v11 }
  0xc3   :  { %2078 = vmatmul.mubr.bf16.vlgmr.msra.gmra.mrb[4].mxu0 %v5595_v8  ;;  %2005 = vmatpush1.bf16.msra.mxu1 %v4859_v23  ;;  %v4876_v8 = vld [vmem:[%s7013_s1 + $0x374] ss:$24 sps:$4 sm:$0xff]   ;;  %v4952_v23 = vld [vmem:[%s7013_s1 + $0x5e0] ss:$24 sps:$4 sm:$0xff]  }
  0xc4   :  { %2087 = vmatpush1.bf16.msra.mxu0 %v4862_v24  ;;  %2006 = vmatprep.subr.bf16.mxu1 %v4867_v25  ;;  %v4957_v24 = vld [vmem:[%s7013_s1 + $0x614] ss:$24 sps:$4 sm:$0xff]  }
  0xc5   :  { %2088 = vmatprep.subr.bf16.mxu0 %v4870_v26  ;;  %2036 = vmatprep.mubr.bf16.mxu1 %v5677_v35  ;;  %v4987_v25 = vld [vmem:[%s7015_s3 + $0x4] ss:$16 sps:$4 sm:$0xff]   ;;  %v4955_v26 = vld [vmem:[%s7013_s1 + $0x610] ss:$24 sps:$4 sm:$0xff]  }
  0xc6   :  { %2118 = vmatprep.mubr.bf16.mxu0 %v5534_v52  ;;  %v4882_v52 = vld [vmem:[%s7013_s1 + $0x3a4] ss:$24 sps:$4 sm:$0xff]  }
  0xc7   :  { %2007 = vmatpush1.bf16.msra.mxu1 %v4865_v27  ;;  %v4985_v27 = vld [vmem:[%s7015_s3] ss:$16 sps:$4 sm:$0xff]  }
  0xc8   :  { %2089 = vmatpush1.bf16.msra.mxu0 %v4868_v28  ;;  %2008 = vmatprep.subr.bf16.mxu1 %v4873_v48  ;;  %v4960_v28 = vld [vmem:[%s7013_s1 + $0x644] ss:$24 sps:$4 sm:$0xff]  }
  0xc9   :  { %2090 = vmatprep.subr.bf16.mxu0 %v4876_v8  ;;  %v4993_v48 = vld [vmem:[%s7015_s3 + $0x24] ss:$16 sps:$4 sm:$0xff]   ;;  %v4958_v8 = vld [vmem:[%s7013_s1 + $0x640] ss:$24 sps:$4 sm:$0xff]  }
  0xcb   :  { %2009 = vmatpush1.bf16.msra.mxu1 %v4871_v29  ;;  %v4991_v29 = vld [vmem:[%s7015_s3 + $0x20] ss:$16 sps:$4 sm:$0xff]  }
  0xcc   :  { %2091 = vmatpush1.bf16.msra.mxu0 %v4874_v30  ;;  %2010 = vmatprep.subr.bf16.mxu1 %v4879_v31  ;;  %v4963_v30 = vld [vmem:[%s7013_s1 + $0x674] ss:$24 sps:$4 sm:$0xff]   ;;  %v4961_v31 = vld [vmem:[%s7013_s1 + $0x670] ss:$24 sps:$4 sm:$0xff]  }
  0xcd   :  { %2092 = vmatprep.subr.bf16.mxu0 %v4882_v52  ;;  %v4966_v52 = vld [vmem:[%s7013_s1 + $0x6a4] ss:$24 sps:$4 sm:$0xff]  }
  0xcf   :  { %2011 = vmatpush1.bf16.msra.mxu1 %v4877_v32  ;;  %v4997_v32 = vld [vmem:[%s7015_s3 + $0x40] ss:$16 sps:$4 sm:$0xff]  }
  0xd0   :  { %2093 = vmatpush1.bf16.msra.mxu0 %v4880_v33  ;;  %2012 = vmatprep.subr.bf16.mxu1 %v4885_v34  ;;  %v4964_v33 = vld [vmem:[%s7013_s1 + $0x6a0] ss:$24 sps:$4 sm:$0xff]   ;;  %v4969_v34 = vld [vmem:[%s7013_s1 + $0x6d4] ss:$24 sps:$4 sm:$0xff]  }
  0xd1   :  { %2094 = vmatprep.subr.bf16.mxu0 %v4888_v36  ;;  %v5003_v36 = vld [vmem:[%s7015_s3 + $0x60] ss:$16 sps:$4 sm:$0xff]  }
  0xd3   :  { %2013 = vmatpush1.bf16.msra.mxu1 %v4883_v37  ;;  %v5011_v37 = vld [vmem:[%s7015_s3 + $0x84] ss:$16 sps:$4 sm:$0xff]  }
  0xd4   :  { %2095 = vmatpush1.bf16.msra.mxu0 %v4886_v38  ;;  %2014 = vmatprep.subr.bf16.mxu1 %v4891_v39  ;;  %v4967_v38 = vld [vmem:[%s7013_s1 + $0x6d0] ss:$24 sps:$4 sm:$0xff]   ;;  %v4972_v39 = vld [vmem:[%s7013_s1 + $0x704] ss:$24 sps:$4 sm:$0xff]  }
  0xd5   :  { %2096 = vmatprep.subr.bf16.mxu0 %v4894_v40  ;;  %v5009_v40 = vld [vmem:[%s7015_s3 + $0x80] ss:$16 sps:$4 sm:$0xff]  }
  0xd7   :  { %2015 = vmatpush1.bf16.msra.mxu1 %v4889_v41  ;;  %v5017_v41 = vld [vmem:[%s7015_s3 + $0xa4] ss:$16 sps:$4 sm:$0xff]  }
  0xd8   :  { %2097 = vmatpush1.bf16.msra.mxu0 %v4892_v42  ;;  %2016 = vmatprep.subr.bf16.mxu1 %v4897_v43  ;;  %v4970_v42 = vld [vmem:[%s7013_s1 + $0x700] ss:$24 sps:$4 sm:$0xff]   ;;  %v4975_v43 = vld [vmem:[%s7013_s1 + $0x734] ss:$24 sps:$4 sm:$0xff]  }
  0xd9   :  { %2098 = vmatprep.subr.bf16.mxu0 %v4900_v44  ;;  %v5015_v44 = vld [vmem:[%s7015_s3 + $0xa0] ss:$16 sps:$4 sm:$0xff]  }
  0xdb   :  { %2017 = vmatpush1.bf16.msra.mxu1 %v4895_v45  ;;  %v5023_v45 = vld [vmem:[%s7015_s3 + $0xc4] ss:$16 sps:$4 sm:$0xff]  }
  0xdc   :  { %2099 = vmatpush1.bf16.msra.mxu0 %v4898_v46  ;;  %2018 = vmatprep.subr.bf16.mxu1 %v4903_v47 }
  0xdd   :  { %2100 = vmatprep.subr.bf16.mxu0 %v4906_v49 }
  0xdf   :  { %2019 = vmatpush1.bf16.msra.mxu1 %v4901_v50  ;;  %v4973_v50 = vld [vmem:[%s7013_s1 + $0x730] ss:$24 sps:$4 sm:$0xff]  }
  0xe0   :  { %2101 = vmatpush1.bf16.msra.mxu0 %v4904_v51  ;;  %2020 = vmatprep.subr.bf16.mxu1 %v4909_v53  ;;  %v5021_v51 = vld [vmem:[%s7015_s3 + $0xc0] ss:$16 sps:$4 sm:$0xff]  }
  0xe1   :  { %2102 = vmatprep.subr.bf16.mxu0 %v4912_v54  ;;  %v4978_v54 = vld [vmem:[%s7013_s1 + $0x764] ss:$24 sps:$4 sm:$0xff]  }
  0xe3   :  { %2021 = vmatpush1.bf16.msra.mxu1 %v4907_v55  ;;  %v5029_v55 = vld [vmem:[%s7015_s3 + $0xe4] ss:$16 sps:$4 sm:$0xff]  }
  0xe4   :  { %2103 = vmatpush1.bf16.msra.mxu0 %v4910_v56  ;;  %2022 = vmatprep.subr.bf16.mxu1 %v4915_v57  ;;  %v4976_v56 = vld [vmem:[%s7013_s1 + $0x760] ss:$24 sps:$4 sm:$0xff]   ;;  %v4981_v57 = vld [vmem:[%s7013_s1 + $0x794] ss:$24 sps:$4 sm:$0xff]  }
  0xe5   :  { %2104 = vmatprep.subr.bf16.mxu0 %v4918_v58  ;;  %v5027_v58 = vld [vmem:[%s7015_s3 + $0xe0] ss:$16 sps:$4 sm:$0xff]  }
  0xe7   :  { %2023 = vmatpush1.bf16.msra.mxu1 %v4913_v59  ;;  %v5035_v59 = vld [vmem:[%s7015_s3 + $0x104] ss:$16 sps:$4 sm:$0xff]  }
  0xe8   :  { %2105 = vmatpush1.bf16.msra.mxu0 %v4916_v60  ;;  %2024 = vmatprep.subr.bf16.mxu1 %v4921_v61  ;;  %v4979_v60 = vld [vmem:[%s7013_s1 + $0x790] ss:$24 sps:$4 sm:$0xff]   ;;  %v4984_v61 = vld [vmem:[%s7013_s1 + $0x7c4] ss:$24 sps:$4 sm:$0xff]  }
  0xe9   :  { %2106 = vmatprep.subr.bf16.mxu0 %v4924_v62  ;;  %v5033_v62 = vld [vmem:[%s7015_s3 + $0x100] ss:$16 sps:$4 sm:$0xff]  }
  0xeb   :  { %2025 = vmatpush1.bf16.msra.mxu1 %v4919_v63  ;;  %v5041_v63 = vld [vmem:[%s7015_s3 + $0x124] ss:$16 sps:$4 sm:$0xff]  }
  0xec   :  { %2107 = vmatpush1.bf16.msra.mxu0 %v4922_v0  ;;  %2026 = vmatprep.subr.bf16.mxu1 %v4927_v1  ;;  %v4982_v0 = vld [vmem:[%s7013_s1 + $0x7c0] ss:$24 sps:$4 sm:$0xff]  }
  0xed   :  { %2108 = vmatprep.subr.bf16.mxu0 %v4930_v2  ;;  %v5039_v1 = vld [vmem:[%s7015_s3 + $0x120] ss:$16 sps:$4 sm:$0xff]   ;;  %v4990_v2 = vld [vmem:[%s7013_s1 + $0x7f4] ss:$24 sps:$4 sm:$0xff]  }
  0xef   :  { %2027 = vmatpush1.bf16.msra.mxu1 %v4925_v3  ;;  %v5047_v3 = vld [vmem:[%s7015_s3 + $0x144] ss:$16 sps:$4 sm:$0xff]  }
  0xf0   :  { %2109 = vmatpush1.bf16.msra.mxu0 %v4928_v4  ;;  %2028 = vmatprep.subr.bf16.mxu1 %v4933_v5  ;;  %v4988_v4 = vld [vmem:[%s7013_s1 + $0x7f0] ss:$24 sps:$4 sm:$0xff]  }
  0xf1   :  { %2110 = vmatprep.subr.bf16.mxu0 %v4936_v6  ;;  %v5045_v5 = vld [vmem:[%s7015_s3 + $0x140] ss:$16 sps:$4 sm:$0xff]   ;;  %v4996_v6 = vld [vmem:[%s7013_s1 + $0x824] ss:$24 sps:$4 sm:$0xff]  }
  0xf3   :  { %2029 = vmatpush1.bf16.msra.mxu1 %v4931_v7  ;;  %v5053_v7 = vld [vmem:[%s7015_s3 + $0x164] ss:$16 sps:$4 sm:$0xff]  }
  0xf4   :  { %2111 = vmatpush1.bf16.msra.mxu0 %v4934_v9  ;;  %2030 = vmatprep.subr.bf16.mxu1 %v4939_v10  ;;  %v4994_v9 = vld [vmem:[%s7013_s1 + $0x820] ss:$24 sps:$4 sm:$0xff]  }
  0xf5   :  { %2112 = vmatprep.subr.bf16.mxu0 %v4942_v12  ;;  %v5051_v10 = vld [vmem:[%s7015_s3 + $0x160] ss:$16 sps:$4 sm:$0xff]   ;;  %v5002_v12 = vld [vmem:[%s7013_s1 + $0x854] ss:$24 sps:$4 sm:$0xff]  }
  0xf7   :  { %2031 = vmatpush1.bf16.msra.mxu1 %v4937_v13  ;;  %v5059_v13 = vld [vmem:[%s7015_s3 + $0x184] ss:$16 sps:$4 sm:$0xff]  }
  0xf8   :  { %2113 = vmatpush1.bf16.msra.mxu0 %v4940_v14  ;;  %2032 = vmatprep.subr.bf16.mxu1 %v4945_v15  ;;  %v5000_v14 = vld [vmem:[%s7013_s1 + $0x850] ss:$24 sps:$4 sm:$0xff]  }
  0xf9   :  { %2114 = vmatprep.subr.bf16.mxu0 %v4948_v16  ;;  %v5057_v15 = vld [vmem:[%s7015_s3 + $0x180] ss:$16 sps:$4 sm:$0xff]   ;;  %v5008_v16 = vld [vmem:[%s7013_s1 + $0x884] ss:$24 sps:$4 sm:$0xff]  }
  0xfb   :  { %2033 = vmatpush1.bf16.msra.mxu1 %v4943_v18  ;;  %v5065_v18 = vld [vmem:[%s7015_s3 + $0x1a4] ss:$16 sps:$4 sm:$0xff]  }
  0xfc   :  { %2115 = vmatpush1.bf16.msra.mxu0 %v4946_v19  ;;  %2034 = vmatprep.subr.bf16.mxu1 %v4951_v20  ;;  %v5006_v19 = vld [vmem:[%s7013_s1 + $0x880] ss:$24 sps:$4 sm:$0xff]  }
  0xfd   :  { %2116 = vmatprep.subr.bf16.mxu0 %v4954_v21  ;;  %v5063_v20 = vld [vmem:[%s7015_s3 + $0x1a0] ss:$16 sps:$4 sm:$0xff]   ;;  %v5014_v21 = vld [vmem:[%s7013_s1 + $0x8b4] ss:$24 sps:$4 sm:$0xff]  }
  0xff   :  { %2035 = vmatpush1.bf16.msra.mxu1 %v4949_v22  ;;  %v5071_v22 = vld [vmem:[%s7015_s3 + $0x1c4] ss:$16 sps:$4 sm:$0xff]  }
 0x100   :  { %2117 = vmatpush1.bf16.msra.mxu0 %v4952_v23  ;;  %3354 = vmatprep.subr.bf16.mxu1 %v4987_v25  ;;  %v5012_v23 = vld [vmem:[%s7013_s1 + $0x8b0] ss:$24 sps:$4 sm:$0xff]   ;;  %v5020_v25 = vld [vmem:[%s7013_s1 + $0x8e4] ss:$24 sps:$4 sm:$0xff]  }
 0x101   :  { %2127 = vmatprep.subr.bf16.mxu0 %v4957_v24  ;;  %v5069_v24 = vld [vmem:[%s7015_s3 + $0x1c0] ss:$16 sps:$4 sm:$0xff]  }
 0x102   :  { %2037 = vmatmul.mubr.bf16.vlgmr.msra.gmra.mrb[4].mxu1 %v5803_v17 }
 0x103   :  { %2119 = vmatmul.mubr.bf16.vlgmr.msra.gmra.mrb[4].mxu0 %v5603_v11  ;;  %3355 = vmatpush1.bf16.msra.mxu1 %v4985_v27  ;;  %v4999_v11 = vld [vmem:[%s7015_s3 + $0x44] ss:$16 sps:$4 sm:$0xff]   ;;  %v5018_v27 = vld [vmem:[%s7013_s1 + $0x8e0] ss:$24 sps:$4 sm:$0xff]  }
 0x104   :  { %2128 = vmatpush1.bf16.msra.mxu0 %v4955_v26  ;;  %3356 = vmatprep.subr.bf16.mxu1 %v4993_v48  ;;  %v5077_v26 = vld [vmem:[%s7015_s3 + $0x1e4] ss:$16 sps:$4 sm:$0xff]   ;;  %v5026_v48 = vld [vmem:[%s7015_s3 + $0xc] ss:$16 sps:$4 sm:$0xff]  }
 0x105   :  { %2129 = vmatprep.subr.bf16.mxu0 %v4960_v28  ;;  %2159 = vmatprep.mubr.bf16.mxu0 %v5677_v35  ;;  %v5005_v35 = vld [vmem:[%s7015_s3 + $0x64] ss:$16 sps:$4 sm:$0xff]   ;;  %v5075_v28 = vld [vmem:[%s7015_s3 + $0x1e0] ss:$16 sps:$4 sm:$0xff]  }
 0x107   :  { %3357 = vmatpush1.bf16.msra.mxu1 %v4991_v29  ;;  %v5024_v29 = vld [vmem:[%s7015_s3 + $0x8] ss:$16 sps:$4 sm:$0xff]  }
 0x108   :  { %2130 = vmatpush1.bf16.msra.mxu0 %v4958_v8  ;;  %3358 = vmatprep.subr.bf16.mxu1 %v4999_v11  ;;  %v5101_v8 = vld [vmem:[%s7015_s3 + $0x204] ss:$16 sps:$4 sm:$0xff]   ;;  %v5030_v11 = vld [vmem:[%s7015_s3 + $0x28] ss:$16 sps:$4 sm:$0xff]  }
 0x109   :  { %2131 = vmatprep.subr.bf16.mxu0 %v4963_v30  ;;  %v5032_v30 = vld [vmem:[%s7015_s3 + $0x2c] ss:$16 sps:$4 sm:$0xff]  }
 0x10b   :  { %3359 = vmatpush1.bf16.msra.mxu1 %v4997_v32  ;;  %v5036_v32 = vld [vmem:[%s7015_s3 + $0x48] ss:$16 sps:$4 sm:$0xff]  }
 0x10c   :  { %2132 = vmatpush1.bf16.msra.mxu0 %v4961_v31  ;;  %3360 = vmatprep.subr.bf16.mxu1 %v5005_v35  ;;  %v329_v31 = vlaneseq }
 0x10d   :  { %2133 = vmatprep.subr.bf16.mxu0 %v4966_v52  ;;  %v5038_v52 = vld [vmem:[%s7015_s3 + $0x4c] ss:$16 sps:$4 sm:$0xff]  }
 0x10e   :  { %v6412_v35 = vshrl.u32 %v329_v31, 7  ;;  %v5141_v31 = vld [vmem:[%s7015_s3 + $0x2e0] ss:$16 sps:$4 sm:$0xff]  }
 0x10f   :  { %3361 = vmatpush1.bf16.msra.mxu1 %v5003_v36  ;;  %v5050_v36 = vld [vmem:[%s7015_s3 + $0x8c] ss:$16 sps:$4 sm:$0xff]  }
 0x110   :  { %2134 = vmatpush1.bf16.msra.mxu0 %v4964_v33  ;;  %3362 = vmatprep.subr.bf16.mxu1 %v5011_v37  ;;  %v5042_v33 = vld [vmem:[%s7015_s3 + $0x68] ss:$16 sps:$4 sm:$0xff]   ;;  %v6427_v37 = vld [vmem:[%s7016_s2] sm:$0x3f] }
 0x111   :  { %2135 = vmatprep.subr.bf16.mxu0 %v4969_v34  ;;  %v331_v34 = vsub.s32 0, %v6412_v35 }
 0x113   :  { %3363 = vmatpush1.bf16.msra.mxu1 %v5009_v40  ;;  %v332_v40 = vrot.slane %v6427_v37, %v331_v34 }
 0x114   :  { %2136 = vmatpush1.bf16.msra.mxu0 %v4967_v38  ;;  %3364 = vmatprep.subr.bf16.mxu1 %v5017_v41  ;;  %v335_v38 = vsub.s32 1, %v6412_v35  ;;  %v5056_v41 = vld [vmem:[%s7015_s3 + $0xac] ss:$16 sps:$4 sm:$0xff]  }
 0x115   :  { %2137 = vmatprep.subr.bf16.mxu0 %v4972_v39  ;;  %v6272_v46 = vpop.f32.mrb[0].mxu1  ;;  %v5048_v39 = vld [vmem:[%s7015_s3 + $0x88] ss:$16 sps:$4 sm:$0xff]  }
 0x116   :  { %v6274_v47 = vpop.f32.mrb[1].mxu1 }
 0x117   :  { %v1837_v49 = vpop.f32.mrb[2].mxu1  ;;  %3365 = vmatpush1.bf16.msra.mxu1 %v5015_v44  ;;  %v1834_v44 = vadd.f32 %v6272_v46, %v332_v40  ;;  %v5068_v46 = vld [vmem:[%s7015_s3 + $0xec] ss:$16 sps:$4 sm:$0xff]  }
 0x118   :  { %2138 = vmatpush1.bf16.msra.mxu0 %v4970_v42  ;;  %v1838_v53 = vpop.f32.mrb[3].mxu1  ;;  %3366 = vmatprep.subr.bf16.mxu1 %v5023_v45  ;;  %v336_v42 = vrot.slane %v6427_v37, %v335_v38  ;;  %v5062_v45 = vld [vmem:[%s7015_s3 + $0xcc] ss:$16 sps:$4 sm:$0xff]  }
 0x119   :  { %2139 = vmatprep.subr.bf16.mxu0 %v4975_v43  ;;  %v5054_v43 = vld [vmem:[%s7015_s3 + $0xa8] ss:$16 sps:$4 sm:$0xff]   ;;  %v5122_v40 = vld [vmem:[%s7015_s3 + $0x26c] ss:$16 sps:$4 sm:$0xff]  }
 0x11a   :  { %v1836_v49 = vadd.f32 %v6274_v47, %v336_v42  ;;  %v5066_v47 = vld [vmem:[%s7015_s3 + $0xe8] ss:$16 sps:$4 sm:$0xff]   ;;  %v5161_v42 = vld [vmem:[%s7015_s3 + $0x344] ss:$16 sps:$4 sm:$0xff]  }
 0x11b   :  { %3367 = vmatpush1.bf16.msra.mxu1 %v5021_v51 }
 0x11c   :  { %2140 = vmatpush1.bf16.msra.mxu0 %v4973_v50  ;;  %3368 = vmatprep.subr.bf16.mxu1 %v5029_v55 }
 0x11d   :  { %2141 = vmatprep.subr.bf16.mxu0 %v4978_v54 }
 0x11f   :  { %3369 = vmatpush1.bf16.msra.mxu1 %v5027_v58  ;;  %v5074_v58 = vld [vmem:[%s7015_s3 + $0x10c] ss:$16 sps:$4 sm:$0xff]  }
 0x120   :  { %2142 = vmatpush1.bf16.msra.mxu0 %v4976_v56  ;;  %3370 = vmatprep.subr.bf16.mxu1 %v5035_v59  ;;  %v5060_v56 = vld [vmem:[%s7015_s3 + $0xc8] ss:$16 sps:$4 sm:$0xff]  }
 0x121   :  { %2143 = vmatprep.subr.bf16.mxu0 %v4981_v57  ;;  %v5072_v59 = vld [vmem:[%s7015_s3 + $0x108] ss:$16 sps:$4 sm:$0xff]  }
 0x123   :  { %3371 = vmatpush1.bf16.msra.mxu1 %v5033_v62 }
 0x124   :  { %2144 = vmatpush1.bf16.msra.mxu0 %v4979_v60  ;;  %3372 = vmatprep.subr.bf16.mxu1 %v5041_v63  ;;  %v5080_v60 = vld [vmem:[%s7015_s3 + $0x12c] ss:$16 sps:$4 sm:$0xff]   ;;  %v5078_v63 = vld [vmem:[%s7015_s3 + $0x128] ss:$16 sps:$4 sm:$0xff]  }
 0x125   :  { %2145 = vmatprep.subr.bf16.mxu0 %v4984_v61 }
 0x127   :  { %3373 = vmatpush1.bf16.msra.mxu1 %v5039_v1  ;;  %v5083_v1 = vld [vmem:[%s7015_s3 + $0x14c] ss:$16 sps:$4 sm:$0xff]  }
 0x128   :  { %2146 = vmatpush1.bf16.msra.mxu0 %v4982_v0  ;;  %3374 = vmatprep.subr.bf16.mxu1 %v5047_v3 }
 0x129   :  { %2147 = vmatprep.subr.bf16.mxu0 %v4990_v2  ;;  %v5099_v2 = vld [vmem:[%s7015_s3 + $0x200] ss:$16 sps:$4 sm:$0xff]  }
 0x12b   :  { %3375 = vmatpush1.bf16.msra.mxu1 %v5045_v5  ;;  %v5081_v5 = vld [vmem:[%s7015_s3 + $0x148] ss:$16 sps:$4 sm:$0xff]  }
 0x12c   :  { %2148 = vmatpush1.bf16.msra.mxu0 %v4988_v4  ;;  %3376 = vmatprep.subr.bf16.mxu1 %v5053_v7  ;;  %v5107_v4 = vld [vmem:[%s7015_s3 + $0x224] ss:$16 sps:$4 sm:$0xff]   ;;  %v5105_v7 = vld [vmem:[%s7015_s3 + $0x220] ss:$16 sps:$4 sm:$0xff]  }
 0x12d   :  { %2149 = vmatprep.subr.bf16.mxu0 %v4996_v6  ;;  %v5086_v6 = vld [vmem:[%s7015_s3 + $0x16c] ss:$16 sps:$4 sm:$0xff]  }
 0x12f   :  { %3377 = vmatpush1.bf16.msra.mxu1 %v5051_v10  ;;  %v5084_v10 = vld [vmem:[%s7015_s3 + $0x168] ss:$16 sps:$4 sm:$0xff]  }
 0x130   :  { %2150 = vmatpush1.bf16.msra.mxu0 %v4994_v9  ;;  %3378 = vmatprep.subr.bf16.mxu1 %v5059_v13  ;;  %v5113_v9 = vld [vmem:[%s7015_s3 + $0x244] ss:$16 sps:$4 sm:$0xff]   ;;  %v5111_v13 = vld [vmem:[%s7015_s3 + $0x240] ss:$16 sps:$4 sm:$0xff]  }
 0x131   :  { %2151 = vmatprep.subr.bf16.mxu0 %v5002_v12  ;;  %v5089_v12 = vld [vmem:[%s7015_s3 + $0x18c] ss:$16 sps:$4 sm:$0xff]  }
 0x133   :  { %3379 = vmatpush1.bf16.msra.mxu1 %v5057_v15  ;;  %v5087_v15 = vld [vmem:[%s7015_s3 + $0x188] ss:$16 sps:$4 sm:$0xff]  }
 0x134   :  { %2152 = vmatpush1.bf16.msra.mxu0 %v5000_v14  ;;  %3380 = vmatprep.subr.bf16.mxu1 %v5065_v18  ;;  %v5119_v14 = vld [vmem:[%s7015_s3 + $0x264] ss:$16 sps:$4 sm:$0xff]   ;;  %v5117_v18 = vld [vmem:[%s7015_s3 + $0x260] ss:$16 sps:$4 sm:$0xff]  }
 0x135   :  { %2153 = vmatprep.subr.bf16.mxu0 %v5008_v16  ;;  %v5092_v16 = vld [vmem:[%s7015_s3 + $0x1ac] ss:$16 sps:$4 sm:$0xff]  }
 0x137   :  { %3381 = vmatpush1.bf16.msra.mxu1 %v5063_v20  ;;  %v5090_v20 = vld [vmem:[%s7015_s3 + $0x1a8] ss:$16 sps:$4 sm:$0xff]  }
 0x138   :  { %2154 = vmatpush1.bf16.msra.mxu0 %v5006_v19  ;;  %3382 = vmatprep.subr.bf16.mxu1 %v5071_v22  ;;  %v5125_v19 = vld [vmem:[%s7015_s3 + $0x284] ss:$16 sps:$4 sm:$0xff]   ;;  %v5123_v22 = vld [vmem:[%s7015_s3 + $0x280] ss:$16 sps:$4 sm:$0xff]  }
 0x139   :  { %2155 = vmatprep.subr.bf16.mxu0 %v5014_v21  ;;  %v5095_v21 = vld [vmem:[%s7015_s3 + $0x1cc] ss:$16 sps:$4 sm:$0xff]  }
 0x13b   :  { %3383 = vmatpush1.bf16.msra.mxu1 %v5069_v24  ;;  %v5093_v24 = vld [vmem:[%s7015_s3 + $0x1c8] ss:$16 sps:$4 sm:$0xff]  }
 0x13c   :  { %2156 = vmatpush1.bf16.msra.mxu0 %v5012_v23  ;;  %3384 = vmatprep.subr.bf16.mxu1 %v5077_v26  ;;  %v5131_v23 = vld [vmem:[%s7015_s3 + $0x2a4] ss:$16 sps:$4 sm:$0xff]   ;;  %v5129_v26 = vld [vmem:[%s7015_s3 + $0x2a0] ss:$16 sps:$4 sm:$0xff]  }
 0x13d   :  { %2157 = vmatprep.subr.bf16.mxu0 %v5020_v25  ;;  %v5098_v25 = vld [vmem:[%s7015_s3 + $0x1ec] ss:$16 sps:$4 sm:$0xff]  }
 0x13f   :  { %3385 = vmatpush1.bf16.msra.mxu1 %v5075_v28  ;;  %v5096_v28 = vld [vmem:[%s7015_s3 + $0x1e8] ss:$16 sps:$4 sm:$0xff]  }
 0x140   :  { %2158 = vmatpush1.bf16.msra.mxu0 %v5018_v27  ;;  %3395 = vmatprep.subr.bf16.mxu1 %v5101_v8  ;;  %v5137_v27 = vld [vmem:[%s7015_s3 + $0x2c4] ss:$16 sps:$4 sm:$0xff]   ;;  %v5135_v8 = vld [vmem:[%s7015_s3 + $0x2c0] ss:$16 sps:$4 sm:$0xff]  }
 0x141   :  { %3477 = vmatprep.subr.bf16.mxu0 %v5026_v48  ;;  %v5104_v48 = vld [vmem:[%s7015_s3 + $0x20c] ss:$16 sps:$4 sm:$0xff]  }
 0x143   :  { %2160 = vmatmul.mubr.bf16.vlgmr.msra.gmra.mrb[4].mxu0 %v5803_v17  ;;  %v5044_v17 = vld [vmem:[%s7015_s3 + $0x6c] ss:$16 sps:$4 sm:$0xff]  }
 0x144   :  { %3478 = vmatpush1.bf16.msra.mxu0 %v5024_v29  ;;  %v5143_v29 = vld [vmem:[%s7015_s3 + $0x2e4] ss:$16 sps:$4 sm:$0xff]  }
 0x145   :  { %3479 = vmatprep.subr.bf16.mxu0 %v5032_v30  ;;  %v5102_v30 = vld [vmem:[%s7015_s3 + $0x208] ss:$16 sps:$4 sm:$0xff]  }
 0x148   :  { %3480 = vmatpush1.bf16.msra.mxu0 %v5030_v11  ;;  %v5110_v11 = vld [vmem:[%s7015_s3 + $0x22c] ss:$16 sps:$4 sm:$0xff]  }
 0x149   :  { %3481 = vmatprep.subr.bf16.mxu0 %v5038_v52  ;;  %v5149_v52 = vld [vmem:[%s7015_s3 + $0x304] ss:$16 sps:$4 sm:$0xff]  }
 0x14c   :  { %3482 = vmatpush1.bf16.msra.mxu0 %v5036_v32  ;;  %v5108_v32 = vld [vmem:[%s7015_s3 + $0x228] ss:$16 sps:$4 sm:$0xff]  }
 0x14d   :  { %3483 = vmatprep.subr.bf16.mxu0 %v5044_v17  ;;  %v5116_v17 = vld [vmem:[%s7015_s3 + $0x24c] ss:$16 sps:$4 sm:$0xff]  }
 0x150   :  { %3484 = vmatpush1.bf16.msra.mxu0 %v5042_v33  ;;  %v5147_v33 = vld [vmem:[%s7015_s3 + $0x300] ss:$16 sps:$4 sm:$0xff]  }
 0x151   :  { %3485 = vmatprep.subr.bf16.mxu0 %v5050_v36  ;;  %v5155_v36 = vld [vmem:[%s7015_s3 + $0x324] ss:$16 sps:$4 sm:$0xff]  }
 0x154   :  { %3486 = vmatpush1.bf16.msra.mxu0 %v5048_v39  ;;  %v5114_v39 = vld [vmem:[%s7015_s3 + $0x248] ss:$16 sps:$4 sm:$0xff]  }
 0x155   :  { %3487 = vmatprep.subr.bf16.mxu0 %v5056_v41  ;;  %v5153_v41 = vld [vmem:[%s7015_s3 + $0x320] ss:$16 sps:$4 sm:$0xff]  }
 0x156   :  { %v1915_v50 = vpop.f32.mrb[0].mxu0 }
 0x157   :  { %v4524_v51 = vadd.f32 %v1915_v50, %v1834_v44  ;;  %v1917_v53 = vpop.f32.mrb[1].mxu0  ;;  %v5128_v44 = vld [vmem:[%s7015_s3 + $0x28c] ss:$16 sps:$4 sm:$0xff]   ;;  %v5126_v50 = vld [vmem:[%s7015_s3 + $0x288] ss:$16 sps:$4 sm:$0xff]  }
 0x158   :  { %v4526_v54 = vadd.f32 %v1917_v53, %v1836_v49  ;;  %v1919_v55 = vpop.f32.mrb[2].mxu0  ;;  %3488 = vmatpush1.bf16.msra.mxu0 %v5054_v43  ;;  %v5120_v43 = vld [vmem:[%s7015_s3 + $0x268] ss:$16 sps:$4 sm:$0xff]   ;;  %v5167_v49 = vld [vmem:[%s7015_s3 + $0x364] ss:$16 sps:$4 sm:$0xff]  }
 0x159   :  { %5323 = vtanh.f32 %v4524_v51  ;;  %v1920_v57 = vpop.f32.mrb[3].mxu0  ;;  %3489 = vmatprep.subr.bf16.mxu0 %v5062_v45  ;;  %v5159_v45 = vld [vmem:[%s7015_s3 + $0x340] ss:$16 sps:$4 sm:$0xff]   ;;  %v5134_v51 = vld [vmem:[%s7015_s3 + $0x2ac] ss:$16 sps:$4 sm:$0xff]  }
 0x15a   :  { %5325 = vtanh.f32 %v4526_v54  ;;  %v5165_v53 = vld [vmem:[%s7015_s3 + $0x360] ss:$16 sps:$4 sm:$0xff]   ;;  %v5173_v54 = vld [vmem:[%s7015_s3 + $0x384] ss:$16 sps:$4 sm:$0xff]   ;;  %v5132_v55 = vld [vmem:[%s7015_s3 + $0x2a8] ss:$16 sps:$4 sm:$0xff]  }
 0x15b   :  { %v5171_v57 = vld [vmem:[%s7015_s3 + $0x380] ss:$16 sps:$4 sm:$0xff]  }
 0x15c   :  { %3490 = vmatpush1.bf16.msra.mxu0 %v5060_v56  ;;  %v5140_v56 = vld [vmem:[%s7015_s3 + $0x2cc] ss:$16 sps:$4 sm:$0xff]  }
 0x15d   :  { %3491 = vmatprep.subr.bf16.mxu0 %v5068_v46  ;;  %v5179_v46 = vld [vmem:[%s7015_s3 + $0x3a4] ss:$16 sps:$4 sm:$0xff]  }
 0x160   :  { %3492 = vmatpush1.bf16.msra.mxu0 %v5066_v47  ;;  %v5138_v47 = vld [vmem:[%s7015_s3 + $0x2c8] ss:$16 sps:$4 sm:$0xff]  }
 0x161   :  { %3493 = vmatprep.subr.bf16.mxu0 %v5074_v58  ;;  %v5146_v58 = vld [vmem:[%s7015_s3 + $0x2ec] ss:$16 sps:$4 sm:$0xff]  }
 0x163   :  { %v5324_v61 = vpop.eup %5323 }
 0x164   :  { %v5326_v62 = vpop.eup %5325  ;;  %3494 = vmatpush1.bf16.msra.mxu0 %v5072_v59  ;;  %v2174_v3 = vpack.c.bf16 %v5324_v61, %v5324_v61  ;;  %v5177_v59 = vld [vmem:[%s7015_s3 + $0x3a0] ss:$16 sps:$4 sm:$0xff]   ;;  %v5144_v61 = vld [vmem:[%s7015_s3 + $0x2e8] ss:$16 sps:$4 sm:$0xff]  }
 0x165   :  { %v2175_v0 = vpack.c.bf16 %v5326_v62, %v5326_v62  ;;  %3495 = vmatprep.subr.bf16.mxu0 %v5080_v60  ;;  %v5185_v60 = vld [vmem:[%s7015_s3 + $0x3c4] ss:$16 sps:$4 sm:$0xff]   ;;  %v5152_v62 = vld [vmem:[%s7015_s3 + $0x30c] ss:$16 sps:$4 sm:$0xff]  }
 0x167   :  { %3386 = vmatprep.mubr.bf16.mxu1 %v2175_v0  ;;  %3509 = vmatprep.mubr.bf16.mxu0 %v2175_v0  ;;  %v5191_v0 = vld [vmem:[%s7015_s3 + $0x3e4] ss:$16 sps:$4 sm:$0xff]  }
 0x168   :  { %3387 = vmatmul.mubr.bf16.vlgmr.msra.gmra.mrb[8].mxu1 %v2174_v3  ;;  %3496 = vmatpush1.bf16.msra.mxu0 %v5078_v63  ;;  %v5183_v63 = vld [vmem:[%s7015_s3 + $0x3c0] ss:$16 sps:$4 sm:$0xff]  }
 0x169   :  { %3497 = vmatprep.subr.bf16.mxu0 %v5083_v1  ;;  %3396 = vmatpush1.bf16.msra.mxu1 %v5099_v2  ;;  %v5150_v1 = vld [vmem:[%s7015_s3 + $0x308] ss:$16 sps:$4 sm:$0xff]   ;;  %v5158_v2 = vld [vmem:[%s7015_s3 + $0x32c] ss:$16 sps:$4 sm:$0xff]  }
 0x16a   :  { %3397 = vmatprep.subr.bf16.mxu1 %v5107_v4  ;;  %v5197_v4 = vld [vmem:[%s7015_s3 + $0x404] ss:$16 sps:$4 sm:$0xff]  }
 0x16c   :  { %3498 = vmatpush1.bf16.msra.mxu0 %v5081_v5  ;;  %v5156_v5 = vld [vmem:[%s7015_s3 + $0x328] ss:$16 sps:$4 sm:$0xff]  }
 0x16d   :  { %3499 = vmatprep.subr.bf16.mxu0 %v5086_v6  ;;  %3398 = vmatpush1.bf16.msra.mxu1 %v5105_v7  ;;  %v5164_v6 = vld [vmem:[%s7015_s3 + $0x34c] ss:$16 sps:$4 sm:$0xff]   ;;  %v5162_v7 = vld [vmem:[%s7015_s3 + $0x348] ss:$16 sps:$4 sm:$0xff]  }
 0x16e   :  { %3399 = vmatprep.subr.bf16.mxu1 %v5113_v9  ;;  %v5170_v9 = vld [vmem:[%s7015_s3 + $0x36c] ss:$16 sps:$4 sm:$0xff]  }
 0x170   :  { %3500 = vmatpush1.bf16.msra.mxu0 %v5084_v10  ;;  %v5168_v10 = vld [vmem:[%s7015_s3 + $0x368] ss:$16 sps:$4 sm:$0xff]  }
 0x171   :  { %3501 = vmatprep.subr.bf16.mxu0 %v5089_v12  ;;  %3400 = vmatpush1.bf16.msra.mxu1 %v5111_v13  ;;  %v5176_v12 = vld [vmem:[%s7015_s3 + $0x38c] ss:$16 sps:$4 sm:$0xff]   ;;  %v5174_v13 = vld [vmem:[%s7015_s3 + $0x388] ss:$16 sps:$4 sm:$0xff]  }
 0x172   :  { %3401 = vmatprep.subr.bf16.mxu1 %v5119_v14  ;;  %v5182_v14 = vld [vmem:[%s7015_s3 + $0x3ac] ss:$16 sps:$4 sm:$0xff]  }
 0x174   :  { %3502 = vmatpush1.bf16.msra.mxu0 %v5087_v15  ;;  %v5180_v15 = vld [vmem:[%s7015_s3 + $0x3a8] ss:$16 sps:$4 sm:$0xff]  }
 0x175   :  { %3503 = vmatprep.subr.bf16.mxu0 %v5092_v16  ;;  %3402 = vmatpush1.bf16.msra.mxu1 %v5117_v18  ;;  %v5188_v16 = vld [vmem:[%s7015_s3 + $0x3cc] ss:$16 sps:$4 sm:$0xff]   ;;  %v5186_v18 = vld [vmem:[%s7015_s3 + $0x3c8] ss:$16 sps:$4 sm:$0xff]  }
 0x176   :  { %3403 = vmatprep.subr.bf16.mxu1 %v5125_v19  ;;  %v5194_v19 = vld [vmem:[%s7015_s3 + $0x3ec] ss:$16 sps:$4 sm:$0xff]  }
 0x178   :  { %3504 = vmatpush1.bf16.msra.mxu0 %v5090_v20  ;;  %v5192_v20 = vld [vmem:[%s7015_s3 + $0x3e8] ss:$16 sps:$4 sm:$0xff]  }
 0x179   :  { %3505 = vmatprep.subr.bf16.mxu0 %v5095_v21  ;;  %3404 = vmatpush1.bf16.msra.mxu1 %v5123_v22  ;;  %v5200_v21 = vld [vmem:[%s7015_s3 + $0x40c] ss:$16 sps:$4 sm:$0xff]   ;;  %v339_v22 = vsub.s32 2, %v6412_v35 }
 0x17a   :  { %3405 = vmatprep.subr.bf16.mxu1 %v5131_v23  ;;  %v343_v23 = vsub.s32 3, %v6412_v35 }
 0x17c   :  { %3506 = vmatpush1.bf16.msra.mxu0 %v5093_v24  ;;  %v340_v24 = vrot.slane %v6427_v37, %v339_v22 }
 0x17d   :  { %3507 = vmatprep.subr.bf16.mxu0 %v5098_v25  ;;  %3406 = vmatpush1.bf16.msra.mxu1 %v5129_v26  ;;  %v344_v25 = vrot.slane %v6427_v37, %v343_v23 }
 0x17e   :  { %3407 = vmatprep.subr.bf16.mxu1 %v5137_v27 }
 0x180   :  { %3508 = vmatpush1.bf16.msra.mxu0 %v5096_v28 }
 0x181   :  { %3518 = vmatprep.subr.bf16.mxu0 %v5104_v48  ;;  %3408 = vmatpush1.bf16.msra.mxu1 %v5135_v8 }
 0x182   :  { %3409 = vmatprep.subr.bf16.mxu1 %v5143_v29 }
 0x183   :  { %3510 = vmatmul.mubr.bf16.vlgmr.msra.gmra.mrb[8].mxu0 %v2174_v3  ;;  %v5189_v3 = vld [vmem:[%s7015_s3 + $0x3e0] ss:$16 sps:$4 sm:$0xff]  }
 0x184   :  { %3519 = vmatpush1.bf16.msra.mxu0 %v5102_v30 }
 0x185   :  { %3520 = vmatprep.subr.bf16.mxu0 %v5110_v11  ;;  %3410 = vmatpush1.bf16.msra.mxu1 %v5141_v31 }
 0x186   :  { %3411 = vmatprep.subr.bf16.mxu1 %v5149_v52  ;;  %v5195_v52 = vld [vmem:[%s7015_s3 + $0x400] ss:$16 sps:$4 sm:$0xff]  }
 0x188   :  { %3521 = vmatpush1.bf16.msra.mxu0 %v5108_v32  ;;  %v5198_v32 = vld [vmem:[%s7015_s3 + $0x408] ss:$16 sps:$4 sm:$0xff]  }
 0x189   :  { %3522 = vmatprep.subr.bf16.mxu0 %v5116_v17  ;;  %3412 = vmatpush1.bf16.msra.mxu1 %v5147_v33  ;;  %v5203_v33 = vld [vmem:[%s7015_s3 + $0x424] ss:$16 sps:$4 sm:$0xff]  }
 0x18a   :  { %3413 = vmatprep.subr.bf16.mxu1 %v5155_v36  ;;  %v5206_v36 = vld [vmem:[%s7015_s3 + $0x42c] ss:$16 sps:$4 sm:$0xff]  }
 0x18c   :  { %3523 = vmatpush1.bf16.msra.mxu0 %v5114_v39  ;;  %v5201_v39 = vld [vmem:[%s7015_s3 + $0x420] ss:$16 sps:$4 sm:$0xff]  }
 0x18d   :  { %3524 = vmatprep.subr.bf16.mxu0 %v5122_v40  ;;  %3414 = vmatpush1.bf16.msra.mxu1 %v5153_v41  ;;  %v5204_v40 = vld [vmem:[%s7015_s3 + $0x428] ss:$16 sps:$4 sm:$0xff]   ;;  %v5209_v41 = vld [vmem:[%s7015_s3 + $0x444] ss:$16 sps:$4 sm:$0xff]  }
 0x18e   :  { %3415 = vmatprep.subr.bf16.mxu1 %v5161_v42  ;;  %v5212_v42 = vld [vmem:[%s7015_s3 + $0x44c] ss:$16 sps:$4 sm:$0xff]  }
 0x190   :  { %3525 = vmatpush1.bf16.msra.mxu0 %v5120_v43  ;;  %v5207_v43 = vld [vmem:[%s7015_s3 + $0x440] ss:$16 sps:$4 sm:$0xff]  }
 0x191   :  { %3526 = vmatprep.subr.bf16.mxu0 %v5128_v44  ;;  %3416 = vmatpush1.bf16.msra.mxu1 %v5159_v45  ;;  %v5210_v44 = vld [vmem:[%s7015_s3 + $0x448] ss:$16 sps:$4 sm:$0xff]   ;;  %v5215_v45 = vld [vmem:[%s7015_s3 + $0x464] ss:$16 sps:$4 sm:$0xff]  }
 0x192   :  { %3417 = vmatprep.subr.bf16.mxu1 %v5167_v49  ;;  %v5218_v49 = vld [vmem:[%s7015_s3 + $0x46c] ss:$16 sps:$4 sm:$0xff]  }
 0x194   :  { %3527 = vmatpush1.bf16.msra.mxu0 %v5126_v50  ;;  %v5213_v50 = vld [vmem:[%s7015_s3 + $0x460] ss:$16 sps:$4 sm:$0xff]  }
 0x195   :  { %3528 = vmatprep.subr.bf16.mxu0 %v5134_v51  ;;  %3418 = vmatpush1.bf16.msra.mxu1 %v5165_v53  ;;  %v5216_v51 = vld [vmem:[%s7015_s3 + $0x468] ss:$16 sps:$4 sm:$0xff]   ;;  %v5221_v53 = vld [vmem:[%s7015_s3 + $0x484] ss:$16 sps:$4 sm:$0xff]  }
 0x196   :  { %3419 = vmatprep.subr.bf16.mxu1 %v5173_v54  ;;  %v5224_v54 = vld [vmem:[%s7015_s3 + $0x48c] ss:$16 sps:$4 sm:$0xff]  }
 0x198   :  { %3529 = vmatpush1.bf16.msra.mxu0 %v5132_v55  ;;  %v5219_v55 = vld [vmem:[%s7015_s3 + $0x480] ss:$16 sps:$4 sm:$0xff]  }
 0x199   :  { %3530 = vmatprep.subr.bf16.mxu0 %v5140_v56  ;;  %3420 = vmatpush1.bf16.msra.mxu1 %v5171_v57  ;;  %v5222_v56 = vld [vmem:[%s7015_s3 + $0x488] ss:$16 sps:$4 sm:$0xff]   ;;  %v5227_v57 = vld [vmem:[%s7015_s3 + $0x4a4] ss:$16 sps:$4 sm:$0xff]  }
 0x19a   :  { %3421 = vmatprep.subr.bf16.mxu1 %v5179_v46  ;;  %v5230_v46 = vld [vmem:[%s7015_s3 + $0x4ac] ss:$16 sps:$4 sm:$0xff]  }
 0x19c   :  { %3531 = vmatpush1.bf16.msra.mxu0 %v5138_v47  ;;  %v5225_v47 = vld [vmem:[%s7015_s3 + $0x4a0] ss:$16 sps:$4 sm:$0xff]  }
 0x19d   :  { %3532 = vmatprep.subr.bf16.mxu0 %v5146_v58  ;;  %3422 = vmatpush1.bf16.msra.mxu1 %v5177_v59  ;;  %v5228_v58 = vld [vmem:[%s7015_s3 + $0x4a8] ss:$16 sps:$4 sm:$0xff]   ;;  %v5233_v59 = vld [vmem:[%s7015_s3 + $0x4c4] ss:$16 sps:$4 sm:$0xff]  }
 0x19e   :  { %3423 = vmatprep.subr.bf16.mxu1 %v5185_v60  ;;  %v5236_v60 = vld [vmem:[%s7015_s3 + $0x4cc] ss:$16 sps:$4 sm:$0xff]  }
 0x1a0   :  { %3533 = vmatpush1.bf16.msra.mxu0 %v5144_v61  ;;  %v5231_v61 = vld [vmem:[%s7015_s3 + $0x4c0] ss:$16 sps:$4 sm:$0xff]  }
 0x1a1   :  { %3534 = vmatprep.subr.bf16.mxu0 %v5152_v62  ;;  %3424 = vmatpush1.bf16.msra.mxu1 %v5183_v63  ;;  %v5234_v62 = vld [vmem:[%s7015_s3 + $0x4c8] ss:$16 sps:$4 sm:$0xff]   ;;  %v5239_v63 = vld [vmem:[%s7015_s3 + $0x4e4] ss:$16 sps:$4 sm:$0xff]  }
 0x1a2   :  { %3425 = vmatprep.subr.bf16.mxu1 %v5191_v0  ;;  %v5242_v0 = vld [vmem:[%s7015_s3 + $0x4ec] ss:$16 sps:$4 sm:$0xff]  }
 0x1a4   :  { %3535 = vmatpush1.bf16.msra.mxu0 %v5150_v1  ;;  %v5237_v1 = vld [vmem:[%s7015_s3 + $0x4e0] ss:$16 sps:$4 sm:$0xff]  }
 0x1a5   :  { %3536 = vmatprep.subr.bf16.mxu0 %v5158_v2  ;;  %3426 = vmatpush1.bf16.msra.mxu1 %v5189_v3  ;;  %v5240_v2 = vld [vmem:[%s7015_s3 + $0x4e8] ss:$16 sps:$4 sm:$0xff]   ;;  %v5245_v3 = vld [vmem:[%s7015_s3 + $0x504] ss:$16 sps:$4 sm:$0xff]  }
 0x1a6   :  { %3436 = vmatprep.subr.bf16.mxu1 %v5197_v4  ;;  %v5248_v4 = vld [vmem:[%s7015_s3 + $0x50c] ss:$16 sps:$4 sm:$0xff]  }
 0x1a8   :  { %3537 = vmatpush1.bf16.msra.mxu0 %v5156_v5  ;;  %v5243_v5 = vld [vmem:[%s7015_s3 + $0x500] ss:$16 sps:$4 sm:$0xff]  }
 0x1a9   :  { %3538 = vmatprep.subr.bf16.mxu0 %v5164_v6  ;;  %v5246_v6 = vld [vmem:[%s7015_s3 + $0x508] ss:$16 sps:$4 sm:$0xff]  }
 0x1ac   :  { %3539 = vmatpush1.bf16.msra.mxu0 %v5162_v7  ;;  %v5251_v7 = vld [vmem:[%s7015_s3 + $0x524] ss:$16 sps:$4 sm:$0xff]  }
 0x1ad   :  { %3540 = vmatprep.subr.bf16.mxu0 %v5170_v9  ;;  %v5254_v9 = vld [vmem:[%s7015_s3 + $0x52c] ss:$16 sps:$4 sm:$0xff]  }
 0x1b0   :  { %3541 = vmatpush1.bf16.msra.mxu0 %v5168_v10  ;;  %v5249_v10 = vld [vmem:[%s7015_s3 + $0x520] ss:$16 sps:$4 sm:$0xff]  }
 0x1b1   :  { %3542 = vmatprep.subr.bf16.mxu0 %v5176_v12  ;;  %v5252_v12 = vld [vmem:[%s7015_s3 + $0x528] ss:$16 sps:$4 sm:$0xff]  }
 0x1b4   :  { %3543 = vmatpush1.bf16.msra.mxu0 %v5174_v13  ;;  %v5257_v13 = vld [vmem:[%s7015_s3 + $0x544] ss:$16 sps:$4 sm:$0xff]  }
 0x1b5   :  { %3544 = vmatprep.subr.bf16.mxu0 %v5182_v14  ;;  %v5260_v14 = vld [vmem:[%s7015_s3 + $0x54c] ss:$16 sps:$4 sm:$0xff]  }
 0x1b8   :  { %3545 = vmatpush1.bf16.msra.mxu0 %v5180_v15  ;;  %v5255_v15 = vld [vmem:[%s7015_s3 + $0x540] ss:$16 sps:$4 sm:$0xff]  }
 0x1b9   :  { %3546 = vmatprep.subr.bf16.mxu0 %v5188_v16  ;;  %v5258_v16 = vld [vmem:[%s7015_s3 + $0x548] ss:$16 sps:$4 sm:$0xff]  }
 0x1bc   :  { %3547 = vmatpush1.bf16.msra.mxu0 %v5186_v18  ;;  %v5263_v18 = vld [vmem:[%s7015_s3 + $0x564] ss:$16 sps:$4 sm:$0xff]  }
 0x1bd   :  { %3548 = vmatprep.subr.bf16.mxu0 %v5194_v19  ;;  %v5266_v19 = vld [vmem:[%s7015_s3 + $0x56c] ss:$16 sps:$4 sm:$0xff]  }
 0x1c0   :  { %3549 = vmatpush1.bf16.msra.mxu0 %v5192_v20  ;;  %v347_v20 = vsub.s32 4, %v6412_v35 }
 0x1c1   :  { %3559 = vmatprep.subr.bf16.mxu0 %v5200_v21  ;;  %v351_v21 = vsub.s32 5, %v6412_v35  ;;  %v5322_v35 = vld [vmem:[%s7017_s5 + $0xb8] sm:$0xff]  }
 0x1d5   :  { %v2038_v26 = vpop.f32.mrb[4].mxu1 }
 0x1d6   :  { %v4527_v27 = vadd.f32 %v2038_v26, %v340_v24  ;;  %v2040_v28 = vpop.f32.mrb[5].mxu1  ;;  %v5261_v24 = vld [vmem:[%s7015_s3 + $0x560] ss:$16 sps:$4 sm:$0xff]   ;;  %v5269_v26 = vld [vmem:[%s7015_s3 + $0x584] ss:$16 sps:$4 sm:$0xff]  }
 0x1d7   :  { %v4528_v48 = vadd.f32 %v2040_v28, %v344_v25  ;;  %v2042_v8 = vpop.f32.mrb[6].mxu1  ;;  %v5264_v25 = vld [vmem:[%s7015_s3 + $0x568] ss:$16 sps:$4 sm:$0xff]   ;;  %v348_v28 = vrot.slane %v6427_v37, %v347_v20 }
 0x1d8   :  { %5327 = vtanh.f32 %v4527_v27  ;;  %v2043_v29 = vpop.f32.mrb[7].mxu1  ;;  %v5272_v27 = vld [vmem:[%s7015_s3 + $0x58c] ss:$16 sps:$4 sm:$0xff]   ;;  %v5267_v8 = vld [vmem:[%s7015_s3 + $0x580] ss:$16 sps:$4 sm:$0xff]  }
 0x1d9   :  { %5329 = vtanh.f32 %v4528_v48  ;;  %v352_v48 = vrot.slane %v6427_v37, %v351_v21  ;;  %v5270_v29 = vld [vmem:[%s7015_s3 + $0x588] ss:$16 sps:$4 sm:$0xff]   ;;  %v5278_v37 = vld [vmem:[%s7015_s3 + $0x5ac] ss:$16 sps:$4 sm:$0xff]  }
 0x1e2   :  { %v5328_v30 = vpop.eup %5327 }
 0x1e3   :  { %v5330_v11 = vpop.eup %5329  ;;  %v2176_v17 = vpack.c.bf16 %v5328_v30, %v5328_v30 }
 0x1e4   :  { %v2177_v31 = vpack.c.bf16 %v5330_v11, %v5330_v11  ;;  %v5275_v11 = vld [vmem:[%s7015_s3 + $0x5a4] ss:$16 sps:$4 sm:$0xff]  }
 0x1e6   :  { %3427 = vmatprep.mubr.bf16.mxu1 %v2177_v31  ;;  %3550 = vmatprep.mubr.bf16.mxu0 %v2177_v31 }
 0x1e7   :  { %3428 = vmatmul.mubr.bf16.vlgmr.msra.gmra.mrb[8].mxu1 %v2176_v17  ;;  %3551 = vmatmul.mubr.bf16.vlgmr.msra.gmra.mrb[8].mxu0 %v2176_v17 }
 0x1e8   :  { %3437 = vmatpush1.bf16.msra.mxu1 %v5195_v52  ;;  %3560 = vmatpush1.bf16.msra.mxu0 %v5198_v32 }
 0x1e9   :  { %3438 = vmatprep.subr.bf16.mxu1 %v5203_v33  ;;  %3561 = vmatprep.subr.bf16.mxu0 %v5206_v36  ;;  %v5273_v36 = vld [vmem:[%s7015_s3 + $0x5a0] ss:$16 sps:$4 sm:$0xff]  }
 0x1ec   :  { %3439 = vmatpush1.bf16.msra.mxu1 %v5201_v39  ;;  %3562 = vmatpush1.bf16.msra.mxu0 %v5204_v40  ;;  %v5276_v39 = vld [vmem:[%s7015_s3 + $0x5a8] ss:$16 sps:$4 sm:$0xff]   ;;  %v5281_v40 = vld [vmem:[%s7015_s3 + $0x5c4] ss:$16 sps:$4 sm:$0xff]  }
 0x1ed   :  { %3440 = vmatprep.subr.bf16.mxu1 %v5209_v41  ;;  %3563 = vmatprep.subr.bf16.mxu0 %v5212_v42  ;;  %v5284_v41 = vld [vmem:[%s7015_s3 + $0x5cc] ss:$16 sps:$4 sm:$0xff]   ;;  %v5279_v42 = vld [vmem:[%s7015_s3 + $0x5c0] ss:$16 sps:$4 sm:$0xff]  }
 0x1f0   :  { %3441 = vmatpush1.bf16.msra.mxu1 %v5207_v43  ;;  %3564 = vmatpush1.bf16.msra.mxu0 %v5210_v44  ;;  %v5282_v43 = vld [vmem:[%s7015_s3 + $0x5c8] ss:$16 sps:$4 sm:$0xff]   ;;  %v5287_v44 = vld [vmem:[%s7015_s3 + $0x5e4] ss:$16 sps:$4 sm:$0xff]  }
 0x1f1   :  { %3442 = vmatprep.subr.bf16.mxu1 %v5215_v45  ;;  %3565 = vmatprep.subr.bf16.mxu0 %v5218_v49  ;;  %v5290_v45 = vld [vmem:[%s7015_s3 + $0x5ec] ss:$16 sps:$4 sm:$0xff]   ;;  %v5285_v49 = vld [vmem:[%s7015_s3 + $0x5e0] ss:$16 sps:$4 sm:$0xff]  }
 0x1f4   :  { %3443 = vmatpush1.bf16.msra.mxu1 %v5213_v50  ;;  %3566 = vmatpush1.bf16.msra.mxu0 %v5216_v51  ;;  %v5288_v50 = vld [vmem:[%s7015_s3 + $0x5e8] ss:$16 sps:$4 sm:$0xff]   ;;  %v5291_v51 = vld [vmem:[%s7017_s5 + $0x40] sm:$0xff]  }
 0x1f5   :  { %3444 = vmatprep.subr.bf16.mxu1 %v5221_v53  ;;  %3567 = vmatprep.subr.bf16.mxu0 %v5224_v54 }
 0x1f8   :  { %3445 = vmatpush1.bf16.msra.mxu1 %v5219_v55  ;;  %3568 = vmatpush1.bf16.msra.mxu0 %v5222_v56  ;;  %v5292_v56 = vld [vmem:[%s7017_s5] sm:$0xff]  }
 0x1f9   :  { %3446 = vmatprep.subr.bf16.mxu1 %v5227_v57  ;;  %3569 = vmatprep.subr.bf16.mxu0 %v5230_v46  ;;  %v5293_v46 = vld [vmem:[%s7017_s5 + $0x48] sm:$0xff]  }
 0x1fc   :  { %3447 = vmatpush1.bf16.msra.mxu1 %v5225_v47  ;;  %3570 = vmatpush1.bf16.msra.mxu0 %v5228_v58  ;;  %v5294_v47 = vld [vmem:[%s7017_s5 + $0x8] sm:$0xff]   ;;  %v5295_v58 = vld [vmem:[%s7017_s5 + $0x50] sm:$0xff]  }
 0x1fd   :  { %3448 = vmatprep.subr.bf16.mxu1 %v5233_v59  ;;  %3571 = vmatprep.subr.bf16.mxu0 %v5236_v60  ;;  %v5296_v59 = vld [vmem:[%s7017_s5 + $0x10] sm:$0xff]   ;;  %v5297_v60 = vld [vmem:[%s7017_s5 + $0x58] sm:$0xff]  }
 0x200   :  { %3449 = vmatpush1.bf16.msra.mxu1 %v5231_v61  ;;  %3572 = vmatpush1.bf16.msra.mxu0 %v5234_v62  ;;  %v5298_v61 = vld [vmem:[%s7017_s5 + $0x18] sm:$0xff]   ;;  %v5299_v62 = vld [vmem:[%s7017_s5 + $0x60] sm:$0xff]  }
 0x201   :  { %3450 = vmatprep.subr.bf16.mxu1 %v5239_v63  ;;  %3573 = vmatprep.subr.bf16.mxu0 %v5242_v0  ;;  %v5300_v63 = vld [vmem:[%s7017_s5 + $0x20] sm:$0xff]   ;;  %v5301_v0 = vld [vmem:[%s7017_s5 + $0x68] sm:$0xff]  }
 0x204   :  { %3451 = vmatpush1.bf16.msra.mxu1 %v5237_v1  ;;  %3574 = vmatpush1.bf16.msra.mxu0 %v5240_v2  ;;  %v5302_v1 = vld [vmem:[%s7017_s5 + $0x28] sm:$0xff]   ;;  %v5303_v2 = vld [vmem:[%s7017_s5 + $0x70] sm:$0xff]  }
 0x205   :  { %3452 = vmatprep.subr.bf16.mxu1 %v5245_v3  ;;  %3575 = vmatprep.subr.bf16.mxu0 %v5248_v4  ;;  %v5304_v3 = vld [vmem:[%s7017_s5 + $0x30] sm:$0xff]   ;;  %v5305_v4 = vld [vmem:[%s7017_s5 + $0x78] sm:$0xff]  }
 0x208   :  { %3453 = vmatpush1.bf16.msra.mxu1 %v5243_v5  ;;  %3576 = vmatpush1.bf16.msra.mxu0 %v5246_v6  ;;  %v5306_v5 = vld [vmem:[%s7017_s5 + $0x38] sm:$0xff]   ;;  %v5307_v6 = vld [vmem:[%s7017_s5 + $0xc0] sm:$0xff]  }
 0x209   :  { %3454 = vmatprep.subr.bf16.mxu1 %v5251_v7  ;;  %3577 = vmatprep.subr.bf16.mxu0 %v5254_v9  ;;  %v2372_v7 = vld [vmem:[%s7018_s4] sm:$0xf] }
 0x20a   :  { %v2377_v9 = vrot.slane %v2372_v7, %v331_v34 }
 0x20c   :  { %3455 = vmatpush1.bf16.msra.mxu1 %v5249_v10  ;;  %3578 = vmatpush1.bf16.msra.mxu0 %v5252_v12  ;;  %v2381_v10 = vrot.slane %v2372_v7, %v335_v38  ;;  %v2389_v12 = vrot.slane %v2372_v7, %v343_v23  ;;  %v5308_v38 = vld [vmem:[%s7017_s5 + $0x80] sm:$0xff]  }
 0x20d   :  { %3456 = vmatprep.subr.bf16.mxu1 %v5257_v13  ;;  %3579 = vmatprep.subr.bf16.mxu0 %v5260_v14 }
 0x210   :  { %3457 = vmatpush1.bf16.msra.mxu1 %v5255_v15  ;;  %3580 = vmatpush1.bf16.msra.mxu0 %v5258_v16 }
 0x211   :  { %3458 = vmatprep.subr.bf16.mxu1 %v5263_v18  ;;  %3581 = vmatprep.subr.bf16.mxu0 %v5266_v19 }
 0x214   :  { %3459 = vmatpush1.bf16.msra.mxu1 %v5261_v24  ;;  %3582 = vmatpush1.bf16.msra.mxu0 %v5264_v25 }
 0x215   :  { %3460 = vmatprep.subr.bf16.mxu1 %v5269_v26  ;;  %3583 = vmatprep.subr.bf16.mxu0 %v5272_v27 }
 0x216   :  { %v2161_v30 = vpop.f32.mrb[4].mxu0 }
 0x217   :  { %v4529_v31 = vadd.f32 %v2161_v30, %v348_v28  ;;  %v2163_v52 = vpop.f32.mrb[5].mxu0  ;;  %v5310_v30 = vld [vmem:[%s7017_s5 + $0x88] sm:$0xff]  }
 0x218   :  { %v4530_v32 = vadd.f32 %v2163_v52, %v352_v48  ;;  %v2165_v17 = vpop.f32.mrb[6].mxu0  ;;  %3461 = vmatpush1.bf16.msra.mxu1 %v5267_v8  ;;  %3584 = vmatpush1.bf16.msra.mxu0 %v5270_v29  ;;  %v5309_v8 = vld [vmem:[%s7017_s5 + $0xc8] sm:$0xff]   ;;  %v5314_v52 = vld [vmem:[%s7017_s5 + $0x98] sm:$0xff]  }
 0x219   :  { %5331 = vtanh.f32 %v4529_v31  ;;  %v2166_v33 = vpop.f32.mrb[7].mxu0  ;;  %3462 = vmatprep.subr.bf16.mxu1 %v5275_v11  ;;  %3585 = vmatprep.subr.bf16.mxu0 %v5278_v37  ;;  %v5311_v11 = vld [vmem:[%s7017_s5 + $0xd0] sm:$0xff]   ;;  %v5313_v31 = vld [vmem:[%s7017_s5 + $0xd8] sm:$0xff]   ;;  %v5316_v17 = vld [vmem:[%s7017_s5 + $0xa0] sm:$0xff]  }
 0x21a   :  { %5333 = vtanh.f32 %v4530_v32  ;;  %v5312_v37 = vld [vmem:[%s7017_s5 + $0x90] sm:$0xff]   ;;  %v5315_v32 = vld [vmem:[%s7017_s5 + $0xe0] sm:$0xff]   ;;  %v5317_v33 = vld [vmem:[%s7017_s5 + $0xe8] sm:$0xff]  }
 0x21c   :  { %3463 = vmatpush1.bf16.msra.mxu1 %v5273_v36  ;;  %3586 = vmatpush1.bf16.msra.mxu0 %v5276_v39  ;;  %v5318_v36 = vld [vmem:[%s7017_s5 + $0xa8] sm:$0xff]   ;;  %v2385_v39 = vrot.slane %v2372_v7, %v339_v22 }
 0x21d   :  { %3464 = vmatprep.subr.bf16.mxu1 %v5281_v40  ;;  %3587 = vmatprep.subr.bf16.mxu0 %v5284_v41  ;;  %v5319_v40 = vld [vmem:[%s7017_s5 + $0xf0] sm:$0xff]  }
 0x21e   :  { %v5320_v41 = vld [vmem:[%s7017_s5 + $0xb0] sm:$0xff]  }
 0x220   :  { %3465 = vmatpush1.bf16.msra.mxu1 %v5279_v42  ;;  %3588 = vmatpush1.bf16.msra.mxu0 %v5282_v43  ;;  %v5321_v43 = vld [vmem:[%s7017_s5 + $0xf8] sm:$0xff]  }
 0x221   :  { %3466 = vmatprep.subr.bf16.mxu1 %v5287_v44  ;;  %3589 = vmatprep.subr.bf16.mxu0 %v5290_v45 }
 0x223   :  { %v5332_v53 = vpop.eup %5331 }
 0x224   :  { %v5334_v54 = vpop.eup %5333  ;;  %3467 = vmatpush1.bf16.msra.mxu1 %v5285_v49  ;;  %3590 = vmatpush1.bf16.msra.mxu0 %v5288_v50  ;;  %v2178_v57 = vpack.c.bf16 %v5332_v53, %v5332_v53 }
 0x225   :  { %v2179_v55 = vpack.c.bf16 %v5334_v54, %v5334_v54  ;;  %4479 = vmatprep.subr.bf16.mxu1 %v5291_v51  ;;  %v4446_v54 = vld [vmem:[%s7019_s6] ss:$0 sm:$0xff] }
 0x227   :  { %3468 = vmatprep.mubr.bf16.mxu1 %v2179_v55  ;;  %3591 = vmatprep.mubr.bf16.mxu0 %v2179_v55 }
 0x228   :  { %3469 = vmatmul.mubr.bf16.vlgmr.msra.gmra.mrb[8].mxu1 %v2178_v57  ;;  %3592 = vmatmul.mubr.bf16.vlgmr.msra.gmra.mrb[8].mxu0 %v2178_v57 }
 0x229   :  { %4480 = vmatpush3.bf16.msra.mxu1 %v5292_v56 }
 0x22a   :  { %4481 = vmatprep.subr.bf16.mxu1 %v5293_v46 }
 0x22d   :  { %4482 = vmatpush3.bf16.msra.mxu1 %v5294_v47 }
 0x22e   :  { %4483 = vmatprep.subr.bf16.mxu1 %v5295_v58 }
 0x231   :  { %4484 = vmatpush3.bf16.msra.mxu1 %v5296_v59 }
 0x232   :  { %4485 = vmatprep.subr.bf16.mxu1 %v5297_v60 }
 0x235   :  { %4486 = vmatpush3.bf16.msra.mxu1 %v5298_v61 }
 0x236   :  { %4487 = vmatprep.subr.bf16.mxu1 %v5299_v62 }
 0x239   :  { %4488 = vmatpush3.bf16.msra.mxu1 %v5300_v63 }
 0x23a   :  { %4489 = vmatprep.subr.bf16.mxu1 %v5301_v0 }
 0x23d   :  { %4490 = vmatpush3.bf16.msra.mxu1 %v5302_v1 }
 0x23e   :  { %4491 = vmatprep.subr.bf16.mxu1 %v5303_v2 }
 0x241   :  { %4492 = vmatpush3.bf16.msra.mxu1 %v5304_v3 }
 0x242   :  { %4493 = vmatprep.subr.bf16.mxu1 %v5305_v4 }
 0x245   :  { %4494 = vmatpush3.bf16.msra.mxu1 %v5306_v5 }
 0x246   :  { %4501 = vmatprep.subr.bf16.mxu1 %v5307_v6 }
 0x2fb   :  { %v3470_v13 = vpop.f32.mrb[8].mxu1  ;;  %v3593_v14 = vpop.f32.mrb[8].mxu0 }
 0x2fc   :  { %v4531_v15 = vadd.f32 %v3470_v13, %v2377_v9  ;;  %v3472_v16 = vpop.f32.mrb[9].mxu1  ;;  %v3595_v18 = vpop.f32.mrb[9].mxu0  ;;  %v4533_v42 = vadd.f32 %v3593_v14, %v2385_v39 }
 0x2fd   :  { %v4532_v19 = vadd.f32 %v3472_v16, %v2381_v10  ;;  %v4534_v20 = vadd.f32 %v3595_v18, %v2389_v12  ;;  %v3474_v21 = vpop.f32.mrb[10].mxu1  ;;  %v3597_v24 = vpop.f32.mrb[10].mxu0 }
 0x2fe   :  { %v3600_v25 = vmax.f32 %v4531_v15, 0.0  ;;  %v3475_v26 = vpop.f32.mrb[11].mxu1  ;;  %v3598_v27 = vpop.f32.mrb[11].mxu0  ;;  %v3602_v22 = vmax.f32 %v4533_v42, 0.0 }
 0x2ff   :  { %v3601_v28 = vmax.f32 %v4532_v19, 0.0  ;;  %v3603_v34 = vmax.f32 %v4534_v20, 0.0 }
 0x300   :  { %v3604_v23 = vpack.c.bf16 %v3600_v25, %v3600_v25  ;;  %v3606_v44 = vpack.c.bf16 %v3602_v22, %v3602_v22 }
 0x301   :  { %v3605_v48 = vpack.c.bf16 %v3601_v28, %v3601_v28  ;;  %v3607_v29 = vpack.c.bf16 %v3603_v34, %v3603_v34 }
 0x303   :  { %3903 = vmatprep.mubr.bf16.mxu1 %v3605_v48 }
 0x304   :  { %3904 = vmatmul.mubr.bf16.vlgmr.msra.gmra.mrb[12].mxu1 %v3604_v23 }
 0x305   :  { %4502 = vmatpush3.bf16.msra.mxu1 %v5308_v38  ;;  %3943 = vmatprep.mubr.bf16.mxu1 %v3607_v29 }
 0x306   :  { %4503 = vmatprep.subr.bf16.mxu1 %v5309_v8 }
 0x309   :  { %4504 = vmatpush3.bf16.msra.mxu1 %v5310_v30 }
 0x30a   :  { %4505 = vmatprep.subr.bf16.mxu1 %v5311_v11 }
 0x30d   :  { %4506 = vmatpush3.bf16.msra.mxu1 %v5312_v37 }
 0x30e   :  { %4507 = vmatprep.subr.bf16.mxu1 %v5313_v31 }
 0x311   :  { %4508 = vmatpush3.bf16.msra.mxu1 %v5314_v52 }
 0x312   :  { %4509 = vmatprep.subr.bf16.mxu1 %v5315_v32 }
 0x315   :  { %4510 = vmatpush3.bf16.msra.mxu1 %v5316_v17 }
 0x316   :  { %4511 = vmatprep.subr.bf16.mxu1 %v5317_v33 }
 0x319   :  { %4512 = vmatpush3.bf16.msra.mxu1 %v5318_v36 }
 0x31a   :  { %4513 = vmatprep.subr.bf16.mxu1 %v5319_v40 }
 0x31d   :  { %4514 = vmatpush3.bf16.msra.mxu1 %v5320_v41 }
 0x31e   :  { %4515 = vmatprep.subr.bf16.mxu1 %v5321_v43 }
 0x321   :  { %4516 = vmatpush3.bf16.msra.mxu1 %v5322_v35 }
 0x324   :  { %3944 = vmatmul.mubr.bf16.vlgmr.msra.gmra.mrb[16].mxu1 %v3606_v44 }
 0x3d7   :  { %v4495_v45 = vpop.f32.mrb[12].mxu1 }
 0x3d8   :  { %v4496_v49 = vpop.f32.mrb[13].mxu1 }
 0x3d9   :  { %v4497_v50 = vadd.f32 %v4496_v49, %v4495_v45  ;;  %v4498_v51 = vpop.f32.mrb[14].mxu1 }
 0x3da   :  { %v4499_v53 = vpop.f32.mrb[15].mxu1 }
 0x3db   :  { %v3906_v57 = vadd.f32 %v4497_v50, %v4446_v54 }
 0x3f7   :  { %v4517_v55 = vpop.f32.mrb[16].mxu1 }
 0x3f8   :  { %v4518_v56 = vpop.f32.mrb[17].mxu1 }
 0x3f9   :  { %v4519_v46 = vadd.f32 %v4518_v56, %v4517_v55  ;;  %v4520_v47 = vpop.f32.mrb[18].mxu1 }
 0x3fa   :  { %v4521_v58 = vpop.f32.mrb[19].mxu1 }
 0x3fb   :  { %v3946_v59 = vadd.f32 %v4519_v46, %v3906_v57 }
 0x3fd   :  { %3951 = vmax.xlane.f32.xlu0 %v3946_v59 }
 0x48a   :  { %v3952_v60 = vpop.xlane.xlu0 %3951 }
 0x48b   :  { %v3953_v61 = vsub.f32 %v3946_v59, %v3952_v60 }
 0x48d   :  { %v3954_v62 = vmul.f32 1.442695, %v3953_v61 }
 0x48f   :  { %5335 = vpow2.f32 %v3954_v62 }
 0x499   :  { %v5336_v63 = vpop.eup %5335 }
 0x49a   :  { %3956 = vadd.xlane.f32.xlu0 %v5336_v63 }
 0x527   :  { %v3957_v0 = vpop.xlane.xlu0 %3956 }
 0x528   :  { %5337 = vlog2.f32 %v3957_v0 }
 0x532   :  { %v5338_v1 = vpop.eup %5337 }
 0x533   :  { %v3959_v2 = vmul.f32 0.6931472, %v5338_v1 }
 0x535   :  { %v3960_v3 = vsub.f32 %v3953_v61, %v3959_v2 }
 0x537   :  { %3961 = vst [vmem:[%s7020_s7] sm:$0xff] %v3960_v3 }

</bundles_post_ra>
